<compile_context>
chip_gen: v7x
topology: tpu7x:2x2x1
jax: 0.10.0
libtpu: 0.0.40
codegen_flags: <defaults>
</compile_context>

<pallas_src>
import jax
import jax.numpy as jnp
from jax.experimental import pallas as pl
from jax.experimental.pallas import tpu as pltpu

BN_EPS = 1e-5


def _round_up(x, m):
    return ((x + m - 1) // m) * m


# ----------------------------------------------------------------------------
# Fused forward kernel
# ----------------------------------------------------------------------------
def _fused_forward_kernel(vps_ref, vpt_ref,                          # (P,1) int32
                          adj_ref, gf0_ref, pw_ref,                  # VMEM inputs
                          ws_ref, wn_ref, b_gnn_ref, g_gnn_ref, bt_gnn_ref,
                          dg_ref, dbt_ref, dw_ref, db_ref,
                          out_ref,                                   # VMEM (P, 128)
                          gf_ref, hid_ref):                          # VMEM scratch
    n, d = gf_ref.shape
    p, hid_pad = hid_ref.shape
    f = pw_ref.shape[1]
    n_gnn = ws_ref.shape[0]
    n_dense = dw_ref.shape[0]
    out_pad = dw_ref.shape[2]
    base = 2 * d + f
    base_pad = hid_pad - (n_dense - 1) * out_pad

    # ---- GNN stack: SAGEConv(mean) -> BN(eval) -> ReLU (+ residual on 2,3) ----
    gf_ref[...] = gf0_ref[...]
    for l in range(n_gnn):
        gf = gf_ref[...]                                   # f32 accumulator
        gf_bf = gf.astype(jnp.bfloat16)
        neigh = jnp.dot(adj_ref[...], gf_bf,               # mean aggregation
                        preferred_element_type=jnp.float32)
        y = (jnp.dot(gf_bf, ws_ref[l], preferred_element_type=jnp.float32)
             + jnp.dot(neigh.astype(jnp.bfloat16), wn_ref[l],
                       preferred_element_type=jnp.float32)
             + b_gnn_ref[l])
        # eval-mode BatchNorm (gamma pre-folded with 1/sqrt(var+eps)) + ReLU
        y = jnp.maximum(y * g_gnn_ref[l] + bt_gnn_ref[l], 0.0)
        # Dropout == identity (eval); layers 2,3 add the residual.
        gf_ref[...] = y if l == 0 else gf + y

    # ---- vertex-pair gather as two one-hot matmuls (no serial row copies) ----
    col = jax.lax.broadcasted_iota(jnp.int32, (p, n), 1)
    oh_s = (col == vps_ref[...]).astype(jnp.bfloat16)       # (P, N)
    oh_t = (col == vpt_ref[...]).astype(jnp.bfloat16)       # (P, N)
    gf_bf = gf_ref[...].astype(jnp.bfloat16)
    gs = jnp.dot(oh_s, gf_bf, preferred_element_type=jnp.float32)   # (P, D)
    gt = jnp.dot(oh_t, gf_bf, preferred_element_type=jnp.float32)   # (P, D)

    # zero-init is load-bearing: padded columns of `hid` must be exactly 0 so
    # the zero-padded dense weights make the padded matmuls exact.
    hid_ref[...] = jnp.zeros_like(hid_ref)
    pieces = [gs, gt, pw_ref[...]]
    if base_pad > base:
        pieces.append(jnp.zeros((p, base_pad - base), jnp.float32))
    hid_ref[:, 0:base_pad] = jnp.concatenate(pieces, axis=1)        # lane-dense

    # ---- densely-connected DNN stack (params zero-padded to hid_pad/out_pad) ----
    for di in range(n_dense):
        h = jnp.maximum(hid_ref[...] * dg_ref[di] + dbt_ref[di], 0.0)
        y = (jnp.dot(h.astype(jnp.bfloat16), dw_ref[di],
                     preferred_element_type=jnp.float32)
             + db_ref[di])                                  # (P, out_pad)
        if di < n_dense - 1:
            off = base_pad + di * out_pad
            hid_ref[:, off:off + out_pad] = y               # 128-aligned slab
        else:
            # final DenseBlock: true c_out=1 lives in column 0; the rest of the
            # lane-dense slab is exact zero from the zero-padded weights/bias.
            out_ref[...] = y


# ----------------------------------------------------------------------------
# Parameter construction (deterministic, synthetic, pre-packed for the kernel)
# ----------------------------------------------------------------------------
def init_params(key, num_vertices, num_node_features, embedding_dim,
                num_pairwise_features, dnn_hidden_dim):
    ghd = num_node_features + embedding_dim                 # gnn_hidden_dim
    keys = iter(jax.random.split(key, 64))
    fold = 1.0 / jnp.sqrt(1.0 + BN_EPS)                     # BN: var=1 running stat

    def nrm(shape, scale=0.1):
        return (scale * jax.random.normal(next(keys), shape)).astype(jnp.float32)

    embedding = nrm((num_vertices, embedding_dim), 1.0)

    # --- GNN layers: separate self / neighbor weights (bf16 MXU operands)
    w_self, w_neigh, b_gnn, g_gnn, bt_gnn = [], [], [], [], []
    for _ in range(3):
        w_self.append(nrm((ghd, ghd)))
        w_neigh.append(nrm((ghd, ghd)))
        b_gnn.append(nrm((1, ghd)))
        gamma = nrm((1, ghd), 0.5) + 1.0                    # BatchNorm weight ~ 1
        g_gnn.append(gamma * fold)                          # folded BN scale
        bt_gnn.append(nrm((1, ghd)))                        # BatchNorm bias
    w_self = jnp.stack(w_self).astype(jnp.bfloat16)
    w_neigh = jnp.stack(w_neigh).astype(jnp.bfloat16)
    b_gnn = jnp.stack(b_gnn)
    g_gnn = jnp.stack(g_gnn)
    bt_gnn = jnp.stack(bt_gnn)

    # --- Dense blocks: zero-padded / stacked so every block is a uniform,
    #     fully lane-dense (P, hid_pad) @ (hid_pad, out_pad) matmul.
    base = ghd * 2 + num_pairwise_features
    base_pad = _round_up(base, 128)
    out_pad = _round_up(dnn_hidden_dim, 128)
    n_dense = 5
    hid_pad = base_pad + (n_dense - 1) * out_pad

    dg = jnp.zeros((n_dense, 1, hid_pad), jnp.float32)
    dbt = jnp.zeros((n_dense, 1, hid_pad), jnp.float32)
    dw = jnp.zeros((n_dense, hid_pad, out_pad), jnp.float32)
    db = jnp.zeros((n_dense, 1, out_pad), jnp.float32)
    for di in range(n_dense):
        c_in = base + di * dnn_hidden_dim
        c_out = dnn_hidden_dim if di < n_dense - 1 else 1
        gamma = nrm((1, c_in), 0.5) + 1.0
        beta = nrm((1, c_in))
        w = nrm((c_in, c_out))
        b = nrm((1, c_out))
        # base features live at padded columns [0:base)
        dg = dg.at[di, 0, 0:base].set(gamma[0, 0:base] * fold)
        dbt = dbt.at[di, 0, 0:base].set(beta[0, 0:base])
        dw = dw.at[di, 0:base, 0:c_out].set(w[0:base])
        # block-j output features live at padded columns [base_pad + j*out_pad, +dnn_hidden_dim)
        for j in range(di):
            s_true = base + j * dnn_hidden_dim
            s_pad = base_pad + j * out_pad
            dg = dg.at[di, 0, s_pad:s_pad + dnn_hidden_dim].set(
                gamma[0, s_true:s_true + dnn_hidden_dim] * fold)
            dbt = dbt.at[di, 0, s_pad:s_pad + dnn_hidden_dim].set(
                beta[0, s_true:s_true + dnn_hidden_dim])
            dw = dw.at[di, s_pad:s_pad + dnn_hidden_dim, 0:c_out].set(
                w[s_true:s_true + dnn_hidden_dim])
        db = db.at[di, 0, 0:c_out].set(b[0])
    dw = dw.astype(jnp.bfloat16)

    return {
        "embedding": embedding,
        "w_self": w_self, "w_neigh": w_neigh,
        "b_gnn": b_gnn, "g_gnn": g_gnn, "bt_gnn": bt_gnn,
        "dg": dg, "dbt": dbt, "dw": dw, "db": db,
    }


# ----------------------------------------------------------------------------
# Forward pass (one pallas_call)
# ----------------------------------------------------------------------------
def model_forward(params, adj_mean, node_features, vertex_pairs,
                  pairwise_features):
    gf0 = jnp.concatenate([node_features, params["embedding"]], axis=-1)
    n, d = gf0.shape
    p = vertex_pairs.shape[0]
    hid_pad = params["dg"].shape[2]
    out_pad = params["dw"].shape[2]

    vp = vertex_pairs.astype(jnp.int32)
    vp_s = vp[:, 0:1]
    vp_t = vp[:, 1:2]
    adj_bf = adj_mean.astype(jnp.bfloat16)

    vmem = pl.BlockSpec(memory_space=pltpu.MemorySpace.VMEM)

    out = pl.pallas_call(
        _fused_forward_kernel,
        out_shape=jax.ShapeDtypeStruct((p, out_pad), jnp.float32),
        in_specs=[vmem] * 14,
        out_specs=vmem,
        scratch_shapes=[
            pltpu.VMEM((n, d), jnp.float32),        # gf (graph features, f32)
            pltpu.VMEM((p, hid_pad), jnp.float32),  # dense-stack hidden (lane-dense)
        ],
    )(vp_s, vp_t, adj_bf, gf0, pairwise_features,
      params["w_self"], params["w_neigh"], params["b_gnn"],
      params["g_gnn"], params["bt_gnn"],
      params["dg"], params["dbt"], params["dw"], params["db"])
    return out[:, 0]                                # squeeze(1)


# ----------------------------------------------------------------------------
# Main
# ----------------------------------------------------------------------------
if __name__ == "__main__":
    # small deterministic configuration
    NUM_VERTICES = 16
    NUM_NODE_FEATURES = 8
    EMBEDDING_DIM = 8
    NUM_PAIRWISE_FEATURES = 8
    DNN_HIDDEN_DIM = 32
    NUM_PAIRS = 8

    key = jax.random.PRNGKey(0)
    k_par, k_feat, k_adj, k_pairs, k_pw = jax.random.split(key, 5)

    params = init_params(k_par, NUM_VERTICES, NUM_NODE_FEATURES, EMBEDDING_DIM,
                         NUM_PAIRWISE_FEATURES, DNN_HIDDEN_DIM)

    node_features = jax.random.normal(
        k_feat, (NUM_VERTICES, NUM_NODE_FEATURES)).astype(jnp.float32)

    # deterministic sparse-ish graph: random edges + a ring so every node
    # has at least one in-neighbor; row-normalize for the "mean" aggregator.
    rand_adj = (jax.random.uniform(k_adj, (NUM_VERTICES, NUM_VERTICES)) < 0.25)
    ring = jnp.eye(NUM_VERTICES, k=1) + jnp.eye(NUM_VERTICES, k=-(NUM_VERTICES - 1))
    adj = jnp.maximum(rand_adj.astype(jnp.float32), ring.astype(jnp.float32))
    adj = adj * (1.0 - jnp.eye(NUM_VERTICES))               # no self loops
    deg = jnp.maximum(adj.sum(axis=1, keepdims=True), 1.0)
    adj_mean = (adj / deg).astype(jnp.float32)              # mean aggregation matrix

    vertex_pairs = jax.random.randint(
        k_pairs, (NUM_PAIRS, 2), 0, NUM_VERTICES, dtype=jnp.int32)
    pairwise_features = jax.random.normal(
        k_pw, (NUM_PAIRS, NUM_PAIRWISE_FEATURES)).astype(jnp.float32)

    fwd = jax.jit(model_forward)
    preds = fwd(params, adj_mean, node_features, vertex_pairs,
                pairwise_features)
    preds = jax.block_until_ready(preds)
    assert preds.shape == (NUM_PAIRS,)
    assert bool(jnp.all(jnp.isfinite(preds)))
    print("KERNEL_OK")
</pallas_src>

<mosaic_0001>
module attributes {stable_mosaic.version = 11 : i64} {
  func.func @_fused_forward_kernel(%arg0: memref<8x1xi32, #tpu.memory_space<vmem>>, %arg1: memref<8x1xi32, #tpu.memory_space<vmem>>, %arg2: memref<16x16xbf16, #tpu.memory_space<vmem>>, %arg3: memref<16x16xf32, #tpu.memory_space<vmem>>, %arg4: memref<8x8xf32, #tpu.memory_space<vmem>>, %arg5: memref<3x16x16xbf16, #tpu.memory_space<vmem>>, %arg6: memref<3x16x16xbf16, #tpu.memory_space<vmem>>, %arg7: memref<3x1x16xf32, #tpu.memory_space<vmem>>, %arg8: memref<3x1x16xf32, #tpu.memory_space<vmem>>, %arg9: memref<3x1x16xf32, #tpu.memory_space<vmem>>, %arg10: memref<5x1x640xf32, #tpu.memory_space<vmem>>, %arg11: memref<5x1x640xf32, #tpu.memory_space<vmem>>, %arg12: memref<5x640x128xbf16, #tpu.memory_space<vmem>>, %arg13: memref<5x1x128xf32, #tpu.memory_space<vmem>>, %arg14: memref<8x128xf32, #tpu.memory_space<vmem>>, %arg15: memref<16x16xf32, #tpu.memory_space<vmem>>, %arg16: memref<8x640xf32, #tpu.memory_space<vmem>>) attributes {dimension_semantics = [], scalar_prefetch = 0 : i64, scratch_operands = 2 : i64, tpu.core_type = #tpu.core_type<tc>} {
    %c0 = arith.constant 0 : index
    %c0_0 = arith.constant 0 : index
    %0 = vector.load %arg3[%c0, %c0_0] : memref<16x16xf32, #tpu.memory_space<vmem>>, vector<16x16xf32>
    %c0_1 = arith.constant 0 : index
    %c0_2 = arith.constant 0 : index
    %1 = vector.load %arg15[%c0_1, %c0_2] : memref<16x16xf32, #tpu.memory_space<vmem>>, vector<16x16xf32>
    tpu.vector_store %arg15[%c0_1, %c0_2], %0 {strides = array<i32>} : memref<16x16xf32, #tpu.memory_space<vmem>>, vector<16x16xf32>,
    %c0_3 = arith.constant 0 : index
    %c0_4 = arith.constant 0 : index
    %2 = vector.load %arg15[%c0_3, %c0_4] : memref<16x16xf32, #tpu.memory_space<vmem>>, vector<16x16xf32>
    %3 = arith.truncf %2 : vector<16x16xf32> to vector<16x16xbf16>
    %c0_5 = arith.constant 0 : index
    %c0_6 = arith.constant 0 : index
    %4 = vector.load %arg2[%c0_5, %c0_6] : memref<16x16xbf16, #tpu.memory_space<vmem>>, vector<16x16xbf16>
    %cst = arith.constant dense<0.000000e+00> : vector<16x16xf32>
    %5 = tpu.matmul %4, %3, %cst {dimension_numbers = #tpu.dot_dimension_numbers<[1], [0], [0], [1], [0, 0, 1, 1], [], []>} : vector<16x16xbf16>, vector<16x16xbf16>, vector<16x16xf32> -> vector<16x16xf32>
    %c0_7 = arith.constant 0 : index
    %c0_8 = arith.constant 0 : index
    %c0_9 = arith.constant 0 : index
    %6 = vector.load %arg5[%c0_7, %c0_8, %c0_9] : memref<3x16x16xbf16, #tpu.memory_space<vmem>>, vector<1x16x16xbf16>
    %7 = vector.shape_cast %6 : vector<1x16x16xbf16> to vector<16x16xbf16>
    %cst_10 = arith.constant dense<0.000000e+00> : vector<16x16xf32>
    %8 = tpu.matmul %3, %7, %cst_10 {dimension_numbers = #tpu.dot_dimension_numbers<[1], [0], [0], [1], [0, 0, 1, 1], [], []>} : vector<16x16xbf16>, vector<16x16xbf16>, vector<16x16xf32> -> vector<16x16xf32>
    %9 = arith.truncf %5 : vector<16x16xf32> to vector<16x16xbf16>
    %c0_11 = arith.constant 0 : index
    %c0_12 = arith.constant 0 : index
    %c0_13 = arith.constant 0 : index
    %10 = vector.load %arg6[%c0_11, %c0_12, %c0_13] : memref<3x16x16xbf16, #tpu.memory_space<vmem>>, vector<1x16x16xbf16>
    %11 = vector.shape_cast %10 : vector<1x16x16xbf16> to vector<16x16xbf16>
    %cst_14 = arith.constant dense<0.000000e+00> : vector<16x16xf32>
    %12 = tpu.matmul %9, %11, %cst_14 {dimension_numbers = #tpu.dot_dimension_numbers<[1], [0], [0], [1], [0, 0, 1, 1], [], []>} : vector<16x16xbf16>, vector<16x16xbf16>, vector<16x16xf32> -> vector<16x16xf32>
    %13 = arith.addf %8, %12 : vector<16x16xf32>
    %c0_15 = arith.constant 0 : index
    %c0_16 = arith.constant 0 : index
    %c0_17 = arith.constant 0 : index
    %14 = vector.load %arg7[%c0_15, %c0_16, %c0_17] : memref<3x1x16xf32, #tpu.memory_space<vmem>>, vector<1x1x16xf32>
    %15 = vector.shape_cast %14 : vector<1x1x16xf32> to vector<1x16xf32>
    %16 = vector.broadcast %15 : vector<1x16xf32> to vector<16x16xf32>
    %17 = arith.addf %13, %16 : vector<16x16xf32>
    %c0_18 = arith.constant 0 : index
    %c0_19 = arith.constant 0 : index
    %c0_20 = arith.constant 0 : index
    %18 = vector.load %arg8[%c0_18, %c0_19, %c0_20] : memref<3x1x16xf32, #tpu.memory_space<vmem>>, vector<1x1x16xf32>
    %19 = vector.shape_cast %18 : vector<1x1x16xf32> to vector<1x16xf32>
    %20 = vector.broadcast %19 : vector<1x16xf32> to vector<16x16xf32>
    %21 = arith.mulf %17, %20 : vector<16x16xf32>
    %c0_21 = arith.constant 0 : index
    %c0_22 = arith.constant 0 : index
    %c0_23 = arith.constant 0 : index
    %22 = vector.load %arg9[%c0_21, %c0_22, %c0_23] : memref<3x1x16xf32, #tpu.memory_space<vmem>>, vector<1x1x16xf32>
    %23 = vector.shape_cast %22 : vector<1x1x16xf32> to vector<1x16xf32>
    %24 = vector.broadcast %23 : vector<1x16xf32> to vector<16x16xf32>
    %25 = arith.addf %21, %24 : vector<16x16xf32>
    %cst_24 = arith.constant 0.000000e+00 : f32
    %26 = vector.broadcast %cst_24 : f32 to vector<16x16xf32>
    %27 = arith.maximumf %25, %26 : vector<16x16xf32>
    %c0_25 = arith.constant 0 : index
    %c0_26 = arith.constant 0 : index
    %28 = vector.load %arg15[%c0_25, %c0_26] : memref<16x16xf32, #tpu.memory_space<vmem>>, vector<16x16xf32>
    tpu.vector_store %arg15[%c0_25, %c0_26], %27 {strides = array<i32>} : memref<16x16xf32, #tpu.memory_space<vmem>>, vector<16x16xf32>,
    %c0_27 = arith.constant 0 : index
    %c0_28 = arith.constant 0 : index
    %29 = vector.load %arg15[%c0_27, %c0_28] : memref<16x16xf32, #tpu.memory_space<vmem>>, vector<16x16xf32>
    %30 = arith.truncf %29 : vector<16x16xf32> to vector<16x16xbf16>
    %c0_29 = arith.constant 0 : index
    %c0_30 = arith.constant 0 : index
    %31 = vector.load %arg2[%c0_29, %c0_30] : memref<16x16xbf16, #tpu.memory_space<vmem>>, vector<16x16xbf16>
    %cst_31 = arith.constant dense<0.000000e+00> : vector<16x16xf32>
    %32 = tpu.matmul %31, %30, %cst_31 {dimension_numbers = #tpu.dot_dimension_numbers<[1], [0], [0], [1], [0, 0, 1, 1], [], []>} : vector<16x16xbf16>, vector<16x16xbf16>, vector<16x16xf32> -> vector<16x16xf32>
    %c1 = arith.constant 1 : index
    %c0_32 = arith.constant 0 : index
    %c0_33 = arith.constant 0 : index
    %33 = vector.load %arg5[%c1, %c0_32, %c0_33] : memref<3x16x16xbf16, #tpu.memory_space<vmem>>, vector<1x16x16xbf16>
    %34 = vector.shape_cast %33 : vector<1x16x16xbf16> to vector<16x16xbf16>
    %cst_34 = arith.constant dense<0.000000e+00> : vector<16x16xf32>
    %35 = tpu.matmul %30, %34, %cst_34 {dimension_numbers = #tpu.dot_dimension_numbers<[1], [0], [0], [1], [0, 0, 1, 1], [], []>} : vector<16x16xbf16>, vector<16x16xbf16>, vector<16x16xf32> -> vector<16x16xf32>
    %36 = arith.truncf %32 : vector<16x16xf32> to vector<16x16xbf16>
    %c1_35 = arith.constant 1 : index
    %c0_36 = arith.constant 0 : index
    %c0_37 = arith.constant 0 : index
    %37 = vector.load %arg6[%c1_35, %c0_36, %c0_37] : memref<3x16x16xbf16, #tpu.memory_space<vmem>>, vector<1x16x16xbf16>
    %38 = vector.shape_cast %37 : vector<1x16x16xbf16> to vector<16x16xbf16>
    %cst_38 = arith.constant dense<0.000000e+00> : vector<16x16xf32>
    %39 = tpu.matmul %36, %38, %cst_38 {dimension_numbers = #tpu.dot_dimension_numbers<[1], [0], [0], [1], [0, 0, 1, 1], [], []>} : vector<16x16xbf16>, vector<16x16xbf16>, vector<16x16xf32> -> vector<16x16xf32>
    %40 = arith.addf %35, %39 : vector<16x16xf32>
    %c1_39 = arith.constant 1 : index
    %c0_40 = arith.constant 0 : index
    %c0_41 = arith.constant 0 : index
    %41 = vector.load %arg7[%c1_39, %c0_40, %c0_41] : memref<3x1x16xf32, #tpu.memory_space<vmem>>, vector<1x1x16xf32>
    %42 = vector.shape_cast %41 : vector<1x1x16xf32> to vector<1x16xf32>
    %43 = vector.broadcast %42 : vector<1x16xf32> to vector<16x16xf32>
    %44 = arith.addf %40, %43 : vector<16x16xf32>
    %c1_42 = arith.constant 1 : index
    %c0_43 = arith.constant 0 : index
    %c0_44 = arith.constant 0 : index
    %45 = vector.load %arg8[%c1_42, %c0_43, %c0_44] : memref<3x1x16xf32, #tpu.memory_space<vmem>>, vector<1x1x16xf32>
    %46 = vector.shape_cast %45 : vector<1x1x16xf32> to vector<1x16xf32>
    %47 = vector.broadcast %46 : vector<1x16xf32> to vector<16x16xf32>
    %48 = arith.mulf %44, %47 : vector<16x16xf32>
    %c1_45 = arith.constant 1 : index
    %c0_46 = arith.constant 0 : index
    %c0_47 = arith.constant 0 : index
    %49 = vector.load %arg9[%c1_45, %c0_46, %c0_47] : memref<3x1x16xf32, #tpu.memory_space<vmem>>, vector<1x1x16xf32>
    %50 = vector.shape_cast %49 : vector<1x1x16xf32> to vector<1x16xf32>
    %51 = vector.broadcast %50 : vector<1x16xf32> to vector<16x16xf32>
    %52 = arith.addf %48, %51 : vector<16x16xf32>
    %cst_48 = arith.constant 0.000000e+00 : f32
    %53 = vector.broadcast %cst_48 : f32 to vector<16x16xf32>
    %54 = arith.maximumf %52, %53 : vector<16x16xf32>
    %55 = arith.addf %29, %54 : vector<16x16xf32>
    %c0_49 = arith.constant 0 : index
    %c0_50 = arith.constant 0 : index
    %56 = vector.load %arg15[%c0_49, %c0_50] : memref<16x16xf32, #tpu.memory_space<vmem>>, vector<16x16xf32>
    tpu.vector_store %arg15[%c0_49, %c0_50], %55 {strides = array<i32>} : memref<16x16xf32, #tpu.memory_space<vmem>>, vector<16x16xf32>,
    %c0_51 = arith.constant 0 : index
    %c0_52 = arith.constant 0 : index
    %57 = vector.load %arg15[%c0_51, %c0_52] : memref<16x16xf32, #tpu.memory_space<vmem>>, vector<16x16xf32>
    %58 = arith.truncf %57 : vector<16x16xf32> to vector<16x16xbf16>
    %c0_53 = arith.constant 0 : index
    %c0_54 = arith.constant 0 : index
    %59 = vector.load %arg2[%c0_53, %c0_54] : memref<16x16xbf16, #tpu.memory_space<vmem>>, vector<16x16xbf16>
    %cst_55 = arith.constant dense<0.000000e+00> : vector<16x16xf32>
    %60 = tpu.matmul %59, %58, %cst_55 {dimension_numbers = #tpu.dot_dimension_numbers<[1], [0], [0], [1], [0, 0, 1, 1], [], []>} : vector<16x16xbf16>, vector<16x16xbf16>, vector<16x16xf32> -> vector<16x16xf32>
    %c2 = arith.constant 2 : index
    %c0_56 = arith.constant 0 : index
    %c0_57 = arith.constant 0 : index
    %61 = vector.load %arg5[%c2, %c0_56, %c0_57] : memref<3x16x16xbf16, #tpu.memory_space<vmem>>, vector<1x16x16xbf16>
    %62 = vector.shape_cast %61 : vector<1x16x16xbf16> to vector<16x16xbf16>
    %cst_58 = arith.constant dense<0.000000e+00> : vector<16x16xf32>
    %63 = tpu.matmul %58, %62, %cst_58 {dimension_numbers = #tpu.dot_dimension_numbers<[1], [0], [0], [1], [0, 0, 1, 1], [], []>} : vector<16x16xbf16>, vector<16x16xbf16>, vector<16x16xf32> -> vector<16x16xf32>
    %64 = arith.truncf %60 : vector<16x16xf32> to vector<16x16xbf16>
    %c2_59 = arith.constant 2 : index
    %c0_60 = arith.constant 0 : index
    %c0_61 = arith.constant 0 : index
    %65 = vector.load %arg6[%c2_59, %c0_60, %c0_61] : memref<3x16x16xbf16, #tpu.memory_space<vmem>>, vector<1x16x16xbf16>
    %66 = vector.shape_cast %65 : vector<1x16x16xbf16> to vector<16x16xbf16>
    %cst_62 = arith.constant dense<0.000000e+00> : vector<16x16xf32>
    %67 = tpu.matmul %64, %66, %cst_62 {dimension_numbers = #tpu.dot_dimension_numbers<[1], [0], [0], [1], [0, 0, 1, 1], [], []>} : vector<16x16xbf16>, vector<16x16xbf16>, vector<16x16xf32> -> vector<16x16xf32>
    %68 = arith.addf %63, %67 : vector<16x16xf32>
    %c2_63 = arith.constant 2 : index
    %c0_64 = arith.constant 0 : index
    %c0_65 = arith.constant 0 : index
    %69 = vector.load %arg7[%c2_63, %c0_64, %c0_65] : memref<3x1x16xf32, #tpu.memory_space<vmem>>, vector<1x1x16xf32>
    %70 = vector.shape_cast %69 : vector<1x1x16xf32> to vector<1x16xf32>
    %71 = vector.broadcast %70 : vector<1x16xf32> to vector<16x16xf32>
    %72 = arith.addf %68, %71 : vector<16x16xf32>
    %c2_66 = arith.constant 2 : index
    %c0_67 = arith.constant 0 : index
    %c0_68 = arith.constant 0 : index
    %73 = vector.load %arg8[%c2_66, %c0_67, %c0_68] : memref<3x1x16xf32, #tpu.memory_space<vmem>>, vector<1x1x16xf32>
    %74 = vector.shape_cast %73 : vector<1x1x16xf32> to vector<1x16xf32>
    %75 = vector.broadcast %74 : vector<1x16xf32> to vector<16x16xf32>
    %76 = arith.mulf %72, %75 : vector<16x16xf32>
    %c2_69 = arith.constant 2 : index
    %c0_70 = arith.constant 0 : index
    %c0_71 = arith.constant 0 : index
    %77 = vector.load %arg9[%c2_69, %c0_70, %c0_71] : memref<3x1x16xf32, #tpu.memory_space<vmem>>, vector<1x1x16xf32>
    %78 = vector.shape_cast %77 : vector<1x1x16xf32> to vector<1x16xf32>
    %79 = vector.broadcast %78 : vector<1x16xf32> to vector<16x16xf32>
    %80 = arith.addf %76, %79 : vector<16x16xf32>
    %cst_72 = arith.constant 0.000000e+00 : f32
    %81 = vector.broadcast %cst_72 : f32 to vector<16x16xf32>
    %82 = arith.maximumf %80, %81 : vector<16x16xf32>
    %83 = arith.addf %57, %82 : vector<16x16xf32>
    %c0_73 = arith.constant 0 : index
    %c0_74 = arith.constant 0 : index
    %84 = vector.load %arg15[%c0_73, %c0_74] : memref<16x16xf32, #tpu.memory_space<vmem>>, vector<16x16xf32>
    tpu.vector_store %arg15[%c0_73, %c0_74], %83 {strides = array<i32>} : memref<16x16xf32, #tpu.memory_space<vmem>>, vector<16x16xf32>,
    %85 = tpu.iota {dimensions = array<i32: 1>} : vector<8x16xi32>
    %c0_75 = arith.constant 0 : index
    %c0_76 = arith.constant 0 : index
    %86 = vector.load %arg0[%c0_75, %c0_76] : memref<8x1xi32, #tpu.memory_space<vmem>>, vector<8x1xi32>
    %87 = vector.broadcast %86 : vector<8x1xi32> to vector<8x16xi32>
    %88 = arith.cmpi eq, %85, %87 : vector<8x16xi32>
    %89 = arith.extui %88 : vector<8x16xi1> to vector<8x16xi32>
    %90 = arith.sitofp %89 : vector<8x16xi32> to vector<8x16xf32>
    %91 = arith.truncf %90 : vector<8x16xf32> to vector<8x16xbf16>
    %c0_77 = arith.constant 0 : index
    %c0_78 = arith.constant 0 : index
    %92 = vector.load %arg1[%c0_77, %c0_78] : memref<8x1xi32, #tpu.memory_space<vmem>>, vector<8x1xi32>
    %93 = vector.broadcast %92 : vector<8x1xi32> to vector<8x16xi32>
    %94 = arith.cmpi eq, %85, %93 : vector<8x16xi32>
    %95 = arith.extui %94 : vector<8x16xi1> to vector<8x16xi32>
    %96 = arith.sitofp %95 : vector<8x16xi32> to vector<8x16xf32>
    %97 = arith.truncf %96 : vector<8x16xf32> to vector<8x16xbf16>
    %c0_79 = arith.constant 0 : index
    %c0_80 = arith.constant 0 : index
    %98 = vector.load %arg15[%c0_79, %c0_80] : memref<16x16xf32, #tpu.memory_space<vmem>>, vector<16x16xf32>
    %99 = arith.truncf %98 : vector<16x16xf32> to vector<16x16xbf16>
    %cst_81 = arith.constant dense<0.000000e+00> : vector<8x16xf32>
    %100 = tpu.matmul %91, %99, %cst_81 {dimension_numbers = #tpu.dot_dimension_numbers<[1], [0], [0], [1], [0, 0, 1, 1], [], []>} : vector<8x16xbf16>, vector<16x16xbf16>, vector<8x16xf32> -> vector<8x16xf32>
    %cst_82 = arith.constant dense<0.000000e+00> : vector<8x16xf32>
    %101 = tpu.matmul %97, %99, %cst_82 {dimension_numbers = #tpu.dot_dimension_numbers<[1], [0], [0], [1], [0, 0, 1, 1], [], []>} : vector<8x16xbf16>, vector<16x16xbf16>, vector<8x16xf32> -> vector<8x16xf32>
    %cst_83 = arith.constant 0.000000e+00 : f32
    %102 = vector.broadcast %cst_83 : f32 to vector<8x640xf32>
    %c0_84 = arith.constant 0 : index
    %c0_85 = arith.constant 0 : index
    %103 = vector.load %arg16[%c0_84, %c0_85] : memref<8x640xf32, #tpu.memory_space<vmem>>, vector<8x640xf32>
    tpu.vector_store %arg16[%c0_84, %c0_85], %102 {strides = array<i32>} : memref<8x640xf32, #tpu.memory_space<vmem>>, vector<8x640xf32>,
    %c0_86 = arith.constant 0 : index
    %c0_87 = arith.constant 0 : index
    %104 = vector.load %arg4[%c0_86, %c0_87] : memref<8x8xf32, #tpu.memory_space<vmem>>, vector<8x8xf32>
    %cst_88 = arith.constant 0.000000e+00 : f32
    %105 = vector.broadcast %cst_88 : f32 to vector<8x88xf32>
    %106 = tpu.concatenate %100, %101, %104, %105 in 1 : vector<8x16xf32>, vector<8x16xf32>, vector<8x8xf32>, vector<8x88xf32> -> vector<8x128xf32>
    %c0_89 = arith.constant 0 : index
    %c0_90 = arith.constant 0 : index
    %107 = vector.load %arg16[%c0_89, %c0_90] : memref<8x640xf32, #tpu.memory_space<vmem>>, vector<8x128xf32>
    tpu.vector_store %arg16[%c0_89, %c0_90], %106 {strides = array<i32>} : memref<8x640xf32, #tpu.memory_space<vmem>>, vector<8x128xf32>,
    %c0_91 = arith.constant 0 : index
    %c0_92 = arith.constant 0 : index
    %108 = vector.load %arg16[%c0_91, %c0_92] : memref<8x640xf32, #tpu.memory_space<vmem>>, vector<8x640xf32>
    %c0_93 = arith.constant 0 : index
    %c0_94 = arith.constant 0 : index
    %c0_95 = arith.constant 0 : index
    %109 = vector.load %arg10[%c0_93, %c0_94, %c0_95] : memref<5x1x640xf32, #tpu.memory_space<vmem>>, vector<1x1x640xf32>
    %110 = vector.shape_cast %109 : vector<1x1x640xf32> to vector<1x640xf32>
    %111 = vector.broadcast %110 : vector<1x640xf32> to vector<8x640xf32>
    %112 = arith.mulf %108, %111 : vector<8x640xf32>
    %c0_96 = arith.constant 0 : index
    %c0_97 = arith.constant 0 : index
    %c0_98 = arith.constant 0 : index
    %113 = vector.load %arg11[%c0_96, %c0_97, %c0_98] : memref<5x1x640xf32, #tpu.memory_space<vmem>>, vector<1x1x640xf32>
    %114 = vector.shape_cast %113 : vector<1x1x640xf32> to vector<1x640xf32>
    %115 = vector.broadcast %114 : vector<1x640xf32> to vector<8x640xf32>
    %116 = arith.addf %112, %115 : vector<8x640xf32>
    %cst_99 = arith.constant 0.000000e+00 : f32
    %117 = vector.broadcast %cst_99 : f32 to vector<8x640xf32>
    %118 = arith.maximumf %116, %117 : vector<8x640xf32>
    %119 = arith.truncf %118 : vector<8x640xf32> to vector<8x640xbf16>
    %c0_100 = arith.constant 0 : index
    %c0_101 = arith.constant 0 : index
    %c0_102 = arith.constant 0 : index
    %120 = vector.load %arg12[%c0_100, %c0_101, %c0_102] : memref<5x640x128xbf16, #tpu.memory_space<vmem>>, vector<1x640x128xbf16>
    %121 = vector.shape_cast %120 : vector<1x640x128xbf16> to vector<640x128xbf16>
    %cst_103 = arith.constant dense<0.000000e+00> : vector<8x128xf32>
    %122 = tpu.matmul %119, %121, %cst_103 {dimension_numbers = #tpu.dot_dimension_numbers<[1], [0], [0], [1], [0, 0, 1, 1], [], []>} : vector<8x640xbf16>, vector<640x128xbf16>, vector<8x128xf32> -> vector<8x128xf32>
    %c0_104 = arith.constant 0 : index
    %c0_105 = arith.constant 0 : index
    %c0_106 = arith.constant 0 : index
    %123 = vector.load %arg13[%c0_104, %c0_105, %c0_106] : memref<5x1x128xf32, #tpu.memory_space<vmem>>, vector<1x1x128xf32>
    %124 = vector.shape_cast %123 : vector<1x1x128xf32> to vector<1x128xf32>
    %125 = vector.broadcast %124 : vector<1x128xf32> to vector<8x128xf32>
    %126 = arith.addf %122, %125 : vector<8x128xf32>
    %c0_107 = arith.constant 0 : index
    %c128 = arith.constant 128 : index
    %127 = vector.load %arg16[%c0_107, %c128] : memref<8x640xf32, #tpu.memory_space<vmem>>, vector<8x128xf32>
    tpu.vector_store %arg16[%c0_107, %c128], %126 {strides = array<i32>} : memref<8x640xf32, #tpu.memory_space<vmem>>, vector<8x128xf32>,
    %c0_108 = arith.constant 0 : index
    %c0_109 = arith.constant 0 : index
    %128 = vector.load %arg16[%c0_108, %c0_109] : memref<8x640xf32, #tpu.memory_space<vmem>>, vector<8x640xf32>
    %c1_110 = arith.constant 1 : index
    %c0_111 = arith.constant 0 : index
    %c0_112 = arith.constant 0 : index
    %129 = vector.load %arg10[%c1_110, %c0_111, %c0_112] : memref<5x1x640xf32, #tpu.memory_space<vmem>>, vector<1x1x640xf32>
    %130 = vector.shape_cast %129 : vector<1x1x640xf32> to vector<1x640xf32>
    %131 = vector.broadcast %130 : vector<1x640xf32> to vector<8x640xf32>
    %132 = arith.mulf %128, %131 : vector<8x640xf32>
    %c1_113 = arith.constant 1 : index
    %c0_114 = arith.constant 0 : index
    %c0_115 = arith.constant 0 : index
    %133 = vector.load %arg11[%c1_113, %c0_114, %c0_115] : memref<5x1x640xf32, #tpu.memory_space<vmem>>, vector<1x1x640xf32>
    %134 = vector.shape_cast %133 : vector<1x1x640xf32> to vector<1x640xf32>
    %135 = vector.broadcast %134 : vector<1x640xf32> to vector<8x640xf32>
    %136 = arith.addf %132, %135 : vector<8x640xf32>
    %cst_116 = arith.constant 0.000000e+00 : f32
    %137 = vector.broadcast %cst_116 : f32 to vector<8x640xf32>
    %138 = arith.maximumf %136, %137 : vector<8x640xf32>
    %139 = arith.truncf %138 : vector<8x640xf32> to vector<8x640xbf16>
    %c1_117 = arith.constant 1 : index
    %c0_118 = arith.constant 0 : index
    %c0_119 = arith.constant 0 : index
    %140 = vector.load %arg12[%c1_117, %c0_118, %c0_119] : memref<5x640x128xbf16, #tpu.memory_space<vmem>>, vector<1x640x128xbf16>
    %141 = vector.shape_cast %140 : vector<1x640x128xbf16> to vector<640x128xbf16>
    %cst_120 = arith.constant dense<0.000000e+00> : vector<8x128xf32>
    %142 = tpu.matmul %139, %141, %cst_120 {dimension_numbers = #tpu.dot_dimension_numbers<[1], [0], [0], [1], [0, 0, 1, 1], [], []>} : vector<8x640xbf16>, vector<640x128xbf16>, vector<8x128xf32> -> vector<8x128xf32>
    %c1_121 = arith.constant 1 : index
    %c0_122 = arith.constant 0 : index
    %c0_123 = arith.constant 0 : index
    %143 = vector.load %arg13[%c1_121, %c0_122, %c0_123] : memref<5x1x128xf32, #tpu.memory_space<vmem>>, vector<1x1x128xf32>
    %144 = vector.shape_cast %143 : vector<1x1x128xf32> to vector<1x128xf32>
    %145 = vector.broadcast %144 : vector<1x128xf32> to vector<8x128xf32>
    %146 = arith.addf %142, %145 : vector<8x128xf32>
    %c0_124 = arith.constant 0 : index
    %c256 = arith.constant 256 : index
    %147 = vector.load %arg16[%c0_124, %c256] : memref<8x640xf32, #tpu.memory_space<vmem>>, vector<8x128xf32>
    tpu.vector_store %arg16[%c0_124, %c256], %146 {strides = array<i32>} : memref<8x640xf32, #tpu.memory_space<vmem>>, vector<8x128xf32>,
    %c0_125 = arith.constant 0 : index
    %c0_126 = arith.constant 0 : index
    %148 = vector.load %arg16[%c0_125, %c0_126] : memref<8x640xf32, #tpu.memory_space<vmem>>, vector<8x640xf32>
    %c2_127 = arith.constant 2 : index
    %c0_128 = arith.constant 0 : index
    %c0_129 = arith.constant 0 : index
    %149 = vector.load %arg10[%c2_127, %c0_128, %c0_129] : memref<5x1x640xf32, #tpu.memory_space<vmem>>, vector<1x1x640xf32>
    %150 = vector.shape_cast %149 : vector<1x1x640xf32> to vector<1x640xf32>
    %151 = vector.broadcast %150 : vector<1x640xf32> to vector<8x640xf32>
    %152 = arith.mulf %148, %151 : vector<8x640xf32>
    %c2_130 = arith.constant 2 : index
    %c0_131 = arith.constant 0 : index
    %c0_132 = arith.constant 0 : index
    %153 = vector.load %arg11[%c2_130, %c0_131, %c0_132] : memref<5x1x640xf32, #tpu.memory_space<vmem>>, vector<1x1x640xf32>
    %154 = vector.shape_cast %153 : vector<1x1x640xf32> to vector<1x640xf32>
    %155 = vector.broadcast %154 : vector<1x640xf32> to vector<8x640xf32>
    %156 = arith.addf %152, %155 : vector<8x640xf32>
    %cst_133 = arith.constant 0.000000e+00 : f32
    %157 = vector.broadcast %cst_133 : f32 to vector<8x640xf32>
    %158 = arith.maximumf %156, %157 : vector<8x640xf32>
    %159 = arith.truncf %158 : vector<8x640xf32> to vector<8x640xbf16>
    %c2_134 = arith.constant 2 : index
    %c0_135 = arith.constant 0 : index
    %c0_136 = arith.constant 0 : index
    %160 = vector.load %arg12[%c2_134, %c0_135, %c0_136] : memref<5x640x128xbf16, #tpu.memory_space<vmem>>, vector<1x640x128xbf16>
    %161 = vector.shape_cast %160 : vector<1x640x128xbf16> to vector<640x128xbf16>
    %cst_137 = arith.constant dense<0.000000e+00> : vector<8x128xf32>
    %162 = tpu.matmul %159, %161, %cst_137 {dimension_numbers = #tpu.dot_dimension_numbers<[1], [0], [0], [1], [0, 0, 1, 1], [], []>} : vector<8x640xbf16>, vector<640x128xbf16>, vector<8x128xf32> -> vector<8x128xf32>
    %c2_138 = arith.constant 2 : index
    %c0_139 = arith.constant 0 : index
    %c0_140 = arith.constant 0 : index
    %163 = vector.load %arg13[%c2_138, %c0_139, %c0_140] : memref<5x1x128xf32, #tpu.memory_space<vmem>>, vector<1x1x128xf32>
    %164 = vector.shape_cast %163 : vector<1x1x128xf32> to vector<1x128xf32>
    %165 = vector.broadcast %164 : vector<1x128xf32> to vector<8x128xf32>
    %166 = arith.addf %162, %165 : vector<8x128xf32>
    %c0_141 = arith.constant 0 : index
    %c384 = arith.constant 384 : index
    %167 = vector.load %arg16[%c0_141, %c384] : memref<8x640xf32, #tpu.memory_space<vmem>>, vector<8x128xf32>
    tpu.vector_store %arg16[%c0_141, %c384], %166 {strides = array<i32>} : memref<8x640xf32, #tpu.memory_space<vmem>>, vector<8x128xf32>,
    %c0_142 = arith.constant 0 : index
    %c0_143 = arith.constant 0 : index
    %168 = vector.load %arg16[%c0_142, %c0_143] : memref<8x640xf32, #tpu.memory_space<vmem>>, vector<8x640xf32>
    %c3 = arith.constant 3 : index
    %c0_144 = arith.constant 0 : index
    %c0_145 = arith.constant 0 : index
    %169 = vector.load %arg10[%c3, %c0_144, %c0_145] : memref<5x1x640xf32, #tpu.memory_space<vmem>>, vector<1x1x640xf32>
    %170 = vector.shape_cast %169 : vector<1x1x640xf32> to vector<1x640xf32>
    %171 = vector.broadcast %170 : vector<1x640xf32> to vector<8x640xf32>
    %172 = arith.mulf %168, %171 : vector<8x640xf32>
    %c3_146 = arith.constant 3 : index
    %c0_147 = arith.constant 0 : index
    %c0_148 = arith.constant 0 : index
    %173 = vector.load %arg11[%c3_146, %c0_147, %c0_148] : memref<5x1x640xf32, #tpu.memory_space<vmem>>, vector<1x1x640xf32>
    %174 = vector.shape_cast %173 : vector<1x1x640xf32> to vector<1x640xf32>
    %175 = vector.broadcast %174 : vector<1x640xf32> to vector<8x640xf32>
    %176 = arith.addf %172, %175 : vector<8x640xf32>
    %cst_149 = arith.constant 0.000000e+00 : f32
    %177 = vector.broadcast %cst_149 : f32 to vector<8x640xf32>
    %178 = arith.maximumf %176, %177 : vector<8x640xf32>
    %179 = arith.truncf %178 : vector<8x640xf32> to vector<8x640xbf16>
    %c3_150 = arith.constant 3 : index
    %c0_151 = arith.constant 0 : index
    %c0_152 = arith.constant 0 : index
    %180 = vector.load %arg12[%c3_150, %c0_151, %c0_152] : memref<5x640x128xbf16, #tpu.memory_space<vmem>>, vector<1x640x128xbf16>
    %181 = vector.shape_cast %180 : vector<1x640x128xbf16> to vector<640x128xbf16>
    %cst_153 = arith.constant dense<0.000000e+00> : vector<8x128xf32>
    %182 = tpu.matmul %179, %181, %cst_153 {dimension_numbers = #tpu.dot_dimension_numbers<[1], [0], [0], [1], [0, 0, 1, 1], [], []>} : vector<8x640xbf16>, vector<640x128xbf16>, vector<8x128xf32> -> vector<8x128xf32>
    %c3_154 = arith.constant 3 : index
    %c0_155 = arith.constant 0 : index
    %c0_156 = arith.constant 0 : index
    %183 = vector.load %arg13[%c3_154, %c0_155, %c0_156] : memref<5x1x128xf32, #tpu.memory_space<vmem>>, vector<1x1x128xf32>
    %184 = vector.shape_cast %183 : vector<1x1x128xf32> to vector<1x128xf32>
    %185 = vector.broadcast %184 : vector<1x128xf32> to vector<8x128xf32>
    %186 = arith.addf %182, %185 : vector<8x128xf32>
    %c0_157 = arith.constant 0 : index
    %c512 = arith.constant 512 : index
    %187 = vector.load %arg16[%c0_157, %c512] : memref<8x640xf32, #tpu.memory_space<vmem>>, vector<8x128xf32>
    tpu.vector_store %arg16[%c0_157, %c512], %186 {strides = array<i32>} : memref<8x640xf32, #tpu.memory_space<vmem>>, vector<8x128xf32>,
    %c0_158 = arith.constant 0 : index
    %c0_159 = arith.constant 0 : index
    %188 = vector.load %arg16[%c0_158, %c0_159] : memref<8x640xf32, #tpu.memory_space<vmem>>, vector<8x640xf32>
    %c4 = arith.constant 4 : index
    %c0_160 = arith.constant 0 : index
    %c0_161 = arith.constant 0 : index
    %189 = vector.load %arg10[%c4, %c0_160, %c0_161] : memref<5x1x640xf32, #tpu.memory_space<vmem>>, vector<1x1x640xf32>
    %190 = vector.shape_cast %189 : vector<1x1x640xf32> to vector<1x640xf32>
    %191 = vector.broadcast %190 : vector<1x640xf32> to vector<8x640xf32>
    %192 = arith.mulf %188, %191 : vector<8x640xf32>
    %c4_162 = arith.constant 4 : index
    %c0_163 = arith.constant 0 : index
    %c0_164 = arith.constant 0 : index
    %193 = vector.load %arg11[%c4_162, %c0_163, %c0_164] : memref<5x1x640xf32, #tpu.memory_space<vmem>>, vector<1x1x640xf32>
    %194 = vector.shape_cast %193 : vector<1x1x640xf32> to vector<1x640xf32>
    %195 = vector.broadcast %194 : vector<1x640xf32> to vector<8x640xf32>
    %196 = arith.addf %192, %195 : vector<8x640xf32>
    %cst_165 = arith.constant 0.000000e+00 : f32
    %197 = vector.broadcast %cst_165 : f32 to vector<8x640xf32>
    %198 = arith.maximumf %196, %197 : vector<8x640xf32>
    %199 = arith.truncf %198 : vector<8x640xf32> to vector<8x640xbf16>
    %c4_166 = arith.constant 4 : index
    %c0_167 = arith.constant 0 : index
    %c0_168 = arith.constant 0 : index
    %200 = vector.load %arg12[%c4_166, %c0_167, %c0_168] : memref<5x640x128xbf16, #tpu.memory_space<vmem>>, vector<1x640x128xbf16>
    %201 = vector.shape_cast %200 : vector<1x640x128xbf16> to vector<640x128xbf16>
    %cst_169 = arith.constant dense<0.000000e+00> : vector<8x128xf32>
    %202 = tpu.matmul %199, %201, %cst_169 {dimension_numbers = #tpu.dot_dimension_numbers<[1], [0], [0], [1], [0, 0, 1, 1], [], []>} : vector<8x640xbf16>, vector<640x128xbf16>, vector<8x128xf32> -> vector<8x128xf32>
    %c4_170 = arith.constant 4 : index
    %c0_171 = arith.constant 0 : index
    %c0_172 = arith.constant 0 : index
    %203 = vector.load %arg13[%c4_170, %c0_171, %c0_172] : memref<5x1x128xf32, #tpu.memory_space<vmem>>, vector<1x1x128xf32>
    %204 = vector.shape_cast %203 : vector<1x1x128xf32> to vector<1x128xf32>
    %205 = vector.broadcast %204 : vector<1x128xf32> to vector<8x128xf32>
    %206 = arith.addf %202, %205 : vector<8x128xf32>
    %c0_173 = arith.constant 0 : index
    %c0_174 = arith.constant 0 : index
    %207 = vector.load %arg14[%c0_173, %c0_174] : memref<8x128xf32, #tpu.memory_space<vmem>>, vector<8x128xf32>
    tpu.vector_store %arg14[%c0_173, %c0_174], %206 {strides = array<i32>} : memref<8x128xf32, #tpu.memory_space<vmem>>, vector<8x128xf32>,
    return
  }
}

</mosaic_0001>

<bundles_post_ra>
// kernel: model_forward.1
= control target key start
LH: loop header
LB: loop body
LE: loop exit
PB: predicated region body
PF: predicated region fallthrough
CT: control target
= control target key end

     0   :  { %19 = vsyncpa [#allocation5], 0  ;;  %s4393_s29 = smov [#allocation4]   ;;  %s4892_s0 = inlined_call_operand.vmem [shape: s32[8,1], index: 0, kind: input, shape index: {}]   ;;  %s4893_s1 = inlined_call_operand.vmem [shape: s32[8,1], index: 1, kind: input, shape index: {}]   ;;  %s4894_s2 = inlined_call_operand.vmem [shape: bf16[16,16], index: 2, kind: input, shape index: {}]   ;;  %s4895_s3 = inlined_call_operand.vmem [shape: f32[16,16], index: 3, kind: input, shape index: {}]   ;;  %s4896_s4 = inlined_call_operand.vmem [shape: f32[8,8], index: 4, kind: input, shape index: {}]   ;;  %s4897_s5 = inlined_call_operand.vmem [shape: bf16[3,16,16], index: 5, kind: input, shape index: {}]   ;;  %s4898_s6 = inlined_call_operand.vmem [shape: bf16[3,16,16], index: 6, kind: input, shape index: {}]   ;;  %s4899_s7 = inlined_call_operand.vmem [shape: f32[3,1,16], index: 7, kind: input, shape index: {}]   ;;  %s4900_s8 = inlined_call_operand.vmem [shape: f32[3,1,16], index: 8, kind: input, shape index: {}]   ;;  %s4901_s9 = inlined_call_operand.vmem [shape: f32[3,1,16], index: 9, kind: input, shape index: {}]   ;;  %s4902_s10 = inlined_call_operand.vmem [shape: f32[5,1,640], index: 10, kind: input, shape index: {}]   ;;  %s4903_s11 = inlined_call_operand.vmem [shape: f32[5,1,640], index: 11, kind: input, shape index: {}]   ;;  %s4904_s12 = inlined_call_operand.hbm [shape: bf16[5,640,128], index: 12, kind: input, shape index: {}]   ;;  %s4905_s13 = inlined_call_operand.vmem [shape: f32[5,1,128], index: 13, kind: input, shape index: {}]   ;;  %s4906_s14 = inlined_call_operand.vmem [shape: f32[8,128], index: 14, kind: output, shape index: {}]  }
   0x1   :  { %s49_s30 = sshll.u32 %s4393_s29, 4  ;;  %s4369_s17 = scalar_lea.hbm %s4904_s12, 25600  ;;  %s50_s30 = int_to_ptr.vmem [resolvable:$true] %s49_s30 }
   0x2   :  { %p4370_p0 = scmp.ne.s32.totalorder %s4904_s12, %s4369_s17  ;;  %p4373_p1 = scmp.lt.u32.totalorder %s4369_s17, %s4904_s12 }
   0x4   :  { %p4375_p2 = pnand %p4373_p1, %p4370_p0 }
   0x6   :  { %4378 = shalt.err (!%p4375_p2)
}
   0x7   :  { %s4379_s22 = scalar_lea.vmem %s50_s30, 25600  ;;  %p4384_p4 = scmp.lt.s32.totalorder %s50_s30, %s50_s30 }
   0x8   :  { %p4380_p3 = scmp.ne.s32.totalorder %s50_s30, %s4379_s22  ;;  %p4385_p5 = scmp.lt.s32.totalorder %s4379_s22, %s4379_s22 }
   0xa   :  { %p4386_p6 = por %p4385_p5, %p4384_p4 }
   0xc   :  { %p4387_p7 = pnand %p4386_p6, %p4380_p3 }
   0xe   :  { %4390 = shalt.err (!%p4387_p7)
}
   0xf   :  { %s4394_s23 = smov 64   ;;  %s4395_s24 = smov 4  }
  0x10   :  { %55 = dma.hbm_to_vmem [thread:$0]  %s4904_s12, 25600, %s50_s30, [#allocation5], %s4394_s23, %s4394_s23, %s4395_s24  }
  0x11   :  { %4391 = dma.done.wait [#allocation5], 25600  }
  0x12   :  { %4392 = vsyncadd [#allocation5], 4294941696  ;;  %v4396_v0 = vmov 0.0   ;;  %vm4397_vm0 = vmmov 0   ;;  %vm64_vm1 = vcmask 130048   ;;  %v62_v1 = vld [vmem:[%s4895_s3] sm:$0xff] }
  0x13   :  { %3983 = vmatprep.subr.bf16.mxu0 %v4396_v0  ;;  %3985 = vmatprep.mubr.msk.bf16.mxu0 %vm4397_vm0, %v4396_v0  ;;  %v63_v2 = vld [vmem:[%s4895_s3 + $0x8] sm:$0xff]  ;;  %65 = vst.msk [vmem:[#allocation2] sm:$0xff] %vm64_vm1, %v62_v1  ;;  %v4158_v5 = vld [vmem:[%s4894_s2] sm:$0xff]   ;;  %s4399_s30 = smov 16   ;;  %s4400_s16 = smov 32   ;;  %vm773_vm4 = vcmask 261120  }
  0x14   :  { %4001 = vmatprep.subr.bf16.mxu1 %v4396_v0  ;;  %4003 = vmatprep.mubr.msk.bf16.mxu1 %vm4397_vm0, %v4396_v0  ;;  %66 = vst.msk [vmem:[#allocation2 + $0x8] sm:$0xff] %vm64_vm1, %v63_v2  ;;  %v4159_v7 = vld [vmem:[%s4898_s6] sm:$0xff]   ;;  %v4162_v39 = vld [vmem:[%s4897_s5 + $0x8] sm:$0xff]   ;;  %vm775_vm5 = vcmask 326656  }
  0x15   :  { %v4160_v11 = vld [vmem:[%s4897_s5] sm:$0xff]   ;;  %v4163_v40 = vld [vmem:[%s4898_s6 + $0x8] sm:$0xff]  }
  0x16   :  { %v3440_v19 = vld [vmem:[%s4899_s7] ss:$0 sm:$0xff]  ;;  %v3454_v51 = vld [vmem:[%s4899_s7 + $0x1] ss:$0 sm:$0xff] }
  0x17   :  { %v3441_v22 = vld [vmem:[%s4900_s8] ss:$0 sm:$0xff]  ;;  %v3456_v54 = vld [vmem:[%s4900_s8 + $0x1] ss:$0 sm:$0xff] }
  0x18   :  { %v3442_v27 = vld [vmem:[%s4901_s9] ss:$0 sm:$0xff]  ;;  %v3458_v59 = vld [vmem:[%s4901_s9 + $0x1] ss:$0 sm:$0xff] }
  0x19   :  { %v4161_v38 = vld [vmem:[%s4894_s2] sm:$0xff]  }
  0x1a   :  { %v67_v3 = vld [vmem:[#allocation2] sm:$0xff] }
  0x1b   :  { %v68_v4 = vld [vmem:[#allocation2 + $0x8] sm:$0xff] }
  0x1c   :  { %v69_v6 = vpack.c.bf16 %v68_v4, %v67_v3 }
  0x1e   :  { %3984 = vmatpush3.bf16.msra.mxu0 %v69_v6 }
  0x1f   :  { %3989 = vmatprep.subr.bf16.mxu0 %v4396_v0 }
  0x21   :  { %3986 = vmatmul.mubr.msk.bf16.vlgmr.msra.gmra.mrb[0].mxu0 %vm64_vm1, %v4158_v5 }
  0x22   :  { %3991 = vmatprep.mubr.msk.bf16.mxu0 %vm4397_vm0, %v4396_v0  ;;  %3990 = vmatpush3.bf16.msra.mxu0 %v4159_v7 }
  0x23   :  { %3995 = vmatprep.subr.bf16.mxu0 %v4396_v0 }
  0xf4   :  { %v114_v8 = vpop.f32.mrb[0].mxu0 }
  0xf5   :  { %v3987_v9 = vpop.f32.mrb[1].mxu0 }
  0xf6   :  { %v117_v10 = vpop.f32.mrb[2].mxu0  ;;  %v4164_v9 = vld [vmem:[%s4894_s2] sm:$0xff]  }
  0xf7   :  { %v123_v12 = vpack.c.bf16 %v117_v10, %v114_v8  ;;  %v3988_v13 = vpop.f32.mrb[3].mxu0  ;;  %v4165_v10 = vld [vmem:[%s4897_s5 + $0x10] sm:$0xff]  }
  0xf8   :  { %v4398_v13 = vmov 0  }
  0xf9   :  { %3992 = vmatmul.mubr.msk.bf16.vlgmr.msra.gmra.mrb[4].mxu0 %vm64_vm1, %v123_v12  ;;  %v661_v12 = vld [vmem:[%s4893_s1] sm:$0xff]  ;;  %4157 = vset.pattern.permute.xlu0 %v4398_v13  ;;  %v4187_v13 = vld [vmem:[#allocation4 + $0xa0] sm:$0xff]  }
  0xfa   :  { %3996 = vmatpush3.bf16.msra.mxu0 %v4160_v11  ;;  %3997 = vmatprep.mubr.msk.bf16.mxu0 %vm4397_vm0, %v4396_v0  ;;  %v4166_v11 = vld [vmem:[%s4898_s6 + $0x10] sm:$0xff]  }
  0xfb   :  { %4007 = vmatprep.subr.bf16.mxu0 %v4396_v0  ;;  %663 = vperm.xlu0 %4157, %v661_v12   ;;  %v4186_v12 = vld [vmem:[#allocation4 + $0x68] sm:$0xff]  }
 0x101   :  { %3998 = vmatmul.mubr.msk.bf16.vlgmr.msra.gmra.mrb[8].mxu0 %vm64_vm1, %v69_v6 }
 0x102   :  { %4009 = vmatprep.mubr.msk.bf16.mxu0 %vm4397_vm0, %v4396_v0  ;;  %4008 = vmatpush3.bf16.msra.mxu0 %v4163_v40 }
 0x103   :  { %4019 = vmatprep.subr.bf16.mxu0 %v4396_v0 }
 0x17a   :  { %v664_v40 = vpop.permute.xlu0 %663 }
 0x1cc   :  { %v169_v14 = vpop.f32.mrb[4].mxu0 }
 0x1cd   :  { %v3993_v15 = vpop.f32.mrb[5].mxu0 }
 0x1ce   :  { %v172_v16 = vpop.f32.mrb[6].mxu0 }
 0x1cf   :  { %v3994_v17 = vpop.f32.mrb[7].mxu0 }
 0x1d4   :  { %v219_v18 = vpop.f32.mrb[8].mxu0 }
 0x1d5   :  { %v220_v20 = vadd.f32 %v219_v18, %v169_v14  ;;  %v3999_v21 = vpop.f32.mrb[9].mxu0  ;;  %v653_v14 = vld [vmem:[%s4892_s0] sm:$0xff] }
 0x1d6   :  { %v222_v23 = vpop.f32.mrb[10].mxu0  ;;  %655 = vperm.xlu0 %4157, %v653_v14  }
 0x1d7   :  { %v233_v24 = vadd.f32 %v3440_v19, %v220_v20  ;;  %v223_v25 = vadd.f32 %v222_v23, %v172_v16  ;;  %v4000_v26 = vpop.f32.mrb[11].mxu0 }
 0x1d9   :  { %v242_v28 = vmul.f32 %v3441_v22, %v233_v24  ;;  %v234_v29 = vadd.f32 %v3440_v19, %v223_v25  ;;  %v3470_v25 = vld [vmem:[%s4899_s7 + $0x2] ss:$0 sm:$0xff] }
 0x1db   :  { %v251_v30 = vadd.f32 %v3442_v27, %v242_v28  ;;  %v243_v31 = vmul.f32 %v3441_v22, %v234_v29  ;;  %v3472_v28 = vld [vmem:[%s4900_s8 + $0x2] ss:$0 sm:$0xff] }
 0x1dd   :  { %v253_v32 = vmax.f32 %v251_v30, 0.0  ;;  %v252_v33 = vadd.f32 %v3442_v27, %v243_v31 }
 0x1df   :  { %255 = vst.msk [vmem:[#allocation2] sm:$0xff] %vm64_vm1, %v253_v32  ;;  %v254_v34 = vmax.f32 %v252_v33, 0.0  ;;  %v3474_v33 = vld [vmem:[%s4901_s9 + $0x2] ss:$0 sm:$0xff] }
 0x1e1   :  { %256 = vst.msk [vmem:[#allocation2 + $0x8] sm:$0xff] %vm64_vm1, %v254_v34 }
 0x1e6   :  { %v257_v35 = vld [vmem:[#allocation2] sm:$0xff] }
 0x1e8   :  { %v258_v36 = vld [vmem:[#allocation2 + $0x8] sm:$0xff] }
 0x1e9   :  { %v259_v37 = vpack.c.bf16 %v258_v36, %v257_v35 }
 0x1eb   :  { %4002 = vmatpush3.bf16.msra.mxu1 %v259_v37 }
 0x1ec   :  { %4013 = vmatprep.subr.bf16.mxu1 %v4396_v0 }
 0x1ee   :  { %4004 = vmatmul.mubr.msk.bf16.vlgmr.msra.gmra.mrb[0].mxu1 %vm64_vm1, %v4161_v38 }
 0x1ef   :  { %4014 = vmatpush3.bf16.msra.mxu1 %v4162_v39  ;;  %4015 = vmatprep.mubr.msk.bf16.mxu1 %vm4397_vm0, %v4396_v0 }
 0x1f0   :  { %4025 = vmatprep.subr.bf16.mxu1 %v4396_v0 }
 0x1f6   :  { %4016 = vmatmul.mubr.msk.bf16.vlgmr.msra.gmra.mrb[4].mxu1 %vm64_vm1, %v259_v37 }
 0x1f7   :  { %4027 = vmatprep.mubr.msk.bf16.mxu1 %vm4397_vm0, %v4396_v0  ;;  %4026 = vmatpush3.bf16.msra.mxu1 %v4166_v11  ;;  %v4185_v11 = vld [vmem:[#allocation4 + $0xe0] sm:$0xff]  }
 0x1f8   :  { %4037 = vmatprep.subr.bf16.mxu1 %v4396_v0 }
 0x2c1   :  { %v304_v41 = vpop.f32.mrb[0].mxu1 }
 0x2c2   :  { %v4005_v42 = vpop.f32.mrb[1].mxu1 }
 0x2c3   :  { %v307_v43 = vpop.f32.mrb[2].mxu1 }
 0x2c4   :  { %v314_v44 = vpack.c.bf16 %v307_v43, %v304_v41  ;;  %v4006_v45 = vpop.f32.mrb[3].mxu1  ;;  %v651_v41 = vlaneseq }
 0x2c6   :  { %4010 = vmatmul.mubr.msk.bf16.vlgmr.msra.gmra.mrb[12].mxu0 %vm64_vm1, %v314_v44  ;;  %v652_v45 = vand.u32 127, %v651_v41 }
 0x2c7   :  { %4021 = vmatprep.mubr.msk.bf16.mxu0 %vm4397_vm0, %v4396_v0 }
 0x2c8   :  { %vm665_vm2 = vcmp.eq.s32.totalorder %v652_v45, %v664_v40 }
 0x2c9   :  { %v411_v46 = vpop.f32.mrb[4].mxu1 }
 0x2ca   :  { %v4017_v47 = vpop.f32.mrb[5].mxu1 }
 0x2cb   :  { %v414_v48 = vpop.f32.mrb[6].mxu1  ;;  %v3476_v47 = vsel %vm665_vm2, 1.0, %v4396_v0 }
 0x2cc   :  { %v4018_v49 = vpop.f32.mrb[7].mxu1 }
 0x399   :  { %v361_v50 = vpop.f32.mrb[12].mxu0 }
 0x39a   :  { %v412_v52 = vadd.f32 %v411_v46, %v361_v50  ;;  %v4011_v53 = vpop.f32.mrb[13].mxu0  ;;  %v656_v46 = vpop.permute.xlu0 %655 }
 0x39b   :  { %v364_v55 = vpop.f32.mrb[14].mxu0  ;;  %vm657_vm3 = vcmp.eq.s32.totalorder %v652_v45, %v656_v46 }
 0x39c   :  { %v426_v56 = vadd.f32 %v3454_v51, %v412_v52  ;;  %v415_v57 = vadd.f32 %v414_v48, %v364_v55  ;;  %v4012_v58 = vpop.f32.mrb[15].mxu0  ;;  %v3475_v48 = vsel %vm657_vm3, 1.0, %v4396_v0  ;;  %v668_v52 = vpack.c.bf16 %v3476_v47, %v3476_v47  ;;  %v4168_v55 = vld [vmem:[#allocation4] sm:$0xff]  }
 0x39d   :  { %v660_v53 = vpack.c.bf16 %v3475_v48, %v3475_v48  ;;  %v4171_v58 = vld [vmem:[#allocation4 + $0x80] sm:$0xff]  }
 0x39e   :  { %v436_v60 = vmul.f32 %v3456_v54, %v426_v56  ;;  %v427_v61 = vadd.f32 %v3454_v51, %v415_v57  ;;  %v4169_v56 = vld [vmem:[#allocation4 + $0xc0] sm:$0xff]   ;;  %v4170_v57 = vld [vmem:[#allocation4 + $0x48] sm:$0xff]  }
 0x3a0   :  { %v446_v62 = vadd.f32 %v3458_v59, %v436_v60  ;;  %v437_v63 = vmul.f32 %v3456_v54, %v427_v61  ;;  %v4167_v54 = vld [vmem:[#allocation4 + $0x40] sm:$0xff]   ;;  %v4172_v60 = vld [vmem:[#allocation4 + $0x8] sm:$0xff]  }
 0x3a1   :  { %v4175_v61 = vld [vmem:[#allocation4 + $0x88] sm:$0xff]  }
 0x3a2   :  { %v448_v1 = vmax.f32 %v446_v62, 0.0  ;;  %v447_v2 = vadd.f32 %v3458_v59, %v437_v63  ;;  %v4173_v59 = vld [vmem:[#allocation4 + $0xc8] sm:$0xff]   ;;  %v4174_v62 = vld [vmem:[#allocation4 + $0x50] sm:$0xff]  }
 0x3a3   :  { %v4177_v63 = vld [vmem:[#allocation4 + $0xd0] sm:$0xff]  }
 0x3a4   :  { %v450_v3 = vadd.f32 %v448_v1, %v257_v35  ;;  %v449_v4 = vmax.f32 %v447_v2, 0.0  ;;  %v4176_v1 = vld [vmem:[#allocation4 + $0x10] sm:$0xff]  }
 0x3a5   :  { %v4179_v2 = vld [vmem:[#allocation4 + $0x90] sm:$0xff]  }
 0x3a6   :  { %452 = vst.msk [vmem:[#allocation2] sm:$0xff] %vm64_vm1, %v450_v3  ;;  %v451_v5 = vadd.f32 %v449_v4, %v258_v36  ;;  %v4178_v3 = vld [vmem:[#allocation4 + $0x58] sm:$0xff]  }
 0x3a7   :  { %v4181_v4 = vld [vmem:[#allocation4 + $0xd8] sm:$0xff]  }
 0x3a8   :  { %453 = vst.msk [vmem:[#allocation2 + $0x8] sm:$0xff] %vm64_vm1, %v451_v5  ;;  %v4180_v5 = vld [vmem:[#allocation4 + $0x18] sm:$0xff]  }
 0x3ad   :  { %v454_v6 = vld [vmem:[#allocation2] sm:$0xff] }
 0x3af   :  { %v455_v7 = vld [vmem:[#allocation2 + $0x8] sm:$0xff] }
 0x3b0   :  { %v456_v8 = vpack.c.bf16 %v455_v7, %v454_v6 }
 0x3b2   :  { %4020 = vmatpush3.bf16.msra.mxu0 %v456_v8 }
 0x3b3   :  { %4031 = vmatprep.subr.bf16.mxu0 %v4396_v0 }
 0x3b5   :  { %4022 = vmatmul.mubr.msk.bf16.vlgmr.msra.gmra.mrb[16].mxu0 %vm64_vm1, %v4164_v9  ;;  %v4608_v9 = vshrl.u32 %v651_v41, 7 }
 0x3b6   :  { %4032 = vmatpush3.bf16.msra.mxu0 %v4165_v10  ;;  %4033 = vmatprep.mubr.msk.bf16.mxu0 %vm4397_vm0, %v4396_v0 }
 0x3b7   :  { %4043 = vmatprep.subr.bf16.mxu0 %v4396_v0  ;;  %v4611_v10 = vsub.s32 0, %v4608_v9  ;;  %v4614_v14 = vsub.s32 1, %v4608_v9 }
 0x3bd   :  { %4034 = vmatmul.mubr.msk.bf16.vlgmr.msra.gmra.mrb[20].mxu0 %vm64_vm1, %v456_v8  ;;  %v4184_v8 = vld [vmem:[#allocation4 + $0x20] sm:$0xff]  }
 0x3be   :  { %4045 = vmatprep.mubr.msk.bf16.mxu0 %vm4397_vm0, %v4396_v0 }
 0x488   :  { %v501_v15 = vpop.f32.mrb[16].mxu0 }
 0x489   :  { %v4023_v16 = vpop.f32.mrb[17].mxu0 }
 0x48a   :  { %v504_v17 = vpop.f32.mrb[18].mxu0  ;;  %v4619_v16 = vld [vmem:[%s4902_s10] sm:$0x1f] }
 0x48b   :  { %v511_v18 = vpack.c.bf16 %v504_v17, %v501_v15  ;;  %v4024_v19 = vpop.f32.mrb[19].mxu0  ;;  %v4188_v15 = vld [vmem:[#allocation4 + $0x28] sm:$0xff]   ;;  %v788_v17 = vrot.slane %v4619_v16, %v4611_v10 }
 0x48c   :  { %v4627_v19 = vsub.s32 2, %v4608_v9 }
 0x48d   :  { %4028 = vmatmul.mubr.msk.bf16.vlgmr.msra.gmra.mrb[8].mxu1 %vm64_vm1, %v511_v18  ;;  %v4624_v18 = vsub.s32 3, %v4608_v9 }
 0x48e   :  { %4039 = vmatprep.mubr.msk.bf16.mxu1 %vm4397_vm0, %v4396_v0 }
 0x490   :  { %v608_v20 = vpop.f32.mrb[20].mxu0 }
 0x491   :  { %v4035_v21 = vpop.f32.mrb[21].mxu0 }
 0x492   :  { %v611_v22 = vpop.f32.mrb[22].mxu0  ;;  %v4190_v21 = vld [vmem:[#allocation4 + $0x70] sm:$0xff]  }
 0x493   :  { %v4036_v23 = vpop.f32.mrb[23].mxu0 }
 0x494   :  { %v792_v23 = vrot.slane %v4619_v16, %v4614_v14 }
 0x560   :  { %v558_v24 = vpop.f32.mrb[8].mxu1 }
 0x561   :  { %v609_v26 = vadd.f32 %v608_v20, %v558_v24  ;;  %v4029_v27 = vpop.f32.mrb[9].mxu1  ;;  %v4189_v20 = vld [vmem:[#allocation4 + $0xe8] sm:$0xff]   ;;  %v4192_v24 = vld [vmem:[#allocation4 + $0x30] sm:$0xff]  }
 0x562   :  { %v561_v29 = vpop.f32.mrb[10].mxu1 }
 0x563   :  { %v623_v30 = vadd.f32 %v3470_v25, %v609_v26  ;;  %v612_v31 = vadd.f32 %v611_v22, %v561_v29  ;;  %v4030_v32 = vpop.f32.mrb[11].mxu1  ;;  %v4191_v22 = vld [vmem:[#allocation4 + $0xa8] sm:$0xff]   ;;  %v811_v26 = vmul.f32 0.0, %v792_v23  ;;  %v4193_v29 = vld [vmem:[#allocation4 + $0xf0] sm:$0xff]  }
 0x565   :  { %v633_v34 = vmul.f32 %v3472_v28, %v623_v30  ;;  %v624_v35 = vadd.f32 %v3470_v25, %v612_v31  ;;  %v4634_v25 = vld [vmem:[%s4903_s11] sm:$0x1f]  ;;  %v4194_v30 = vld [vmem:[#allocation4 + $0x78] sm:$0xff]  }
 0x566   :  { %v824_v27 = vrot.slane %v4634_v25, %v4614_v14  ;;  %v4195_v31 = vld [vmem:[#allocation4 + $0xb0] sm:$0xff]   ;;  %v820_v32 = vrot.slane %v4634_v25, %v4611_v10  ;;  %v828_v40 = vrot.slane %v4634_v25, %v4627_v19 }
 0x567   :  { %v643_v36 = vadd.f32 %v3474_v33, %v633_v34  ;;  %v634_v37 = vmul.f32 %v3472_v28, %v624_v35  ;;  %v800_v28 = vrot.slane %v4619_v16, %v4624_v18  ;;  %v4196_v34 = vld [vmem:[#allocation4 + $0x38] sm:$0xff]  }
 0x568   :  { %v4197_v35 = vld [vmem:[#allocation4 + $0xf8] sm:$0xff]  }
 0x569   :  { %v645_v38 = vmax.f32 %v643_v36, 0.0  ;;  %v644_v39 = vadd.f32 %v3474_v33, %v634_v37  ;;  %v796_v33 = vrot.slane %v4619_v16, %v4627_v19  ;;  %v843_v36 = vadd.f32 %v824_v27, %v811_v26 }
 0x56a   :  { %v813_v37 = vmul.f32 0.0, %v800_v28 }
 0x56b   :  { %v647_v42 = vadd.f32 %v645_v38, %v454_v6  ;;  %v646_v43 = vmax.f32 %v644_v39, 0.0  ;;  %v4183_v6 = vld [vmem:[#allocation4 + $0x98] sm:$0xff]   ;;  %v832_v38 = vrot.slane %v4634_v25, %v4624_v18  ;;  %v812_v39 = vmul.f32 0.0, %v796_v33 }
 0x56c   :  { %v848_v41 = vmax.f32 %v843_v36, 0.0 }
 0x56d   :  { %649 = vst.msk [vmem:[#allocation2] sm:$0xff] %vm64_vm1, %v647_v42  ;;  %v648_v44 = vadd.f32 %v646_v43, %v455_v7  ;;  %v4182_v7 = vld [vmem:[#allocation4 + $0x60] sm:$0xff]   ;;  %v4198_v42 = vld [vmem:[#allocation4 + $0xb8] sm:$0xff]   ;;  %v845_v43 = vadd.f32 %v832_v38, %v813_v37 }
 0x56e   :  { %v853_v47 = vpack.c.bf16 %v848_v41, %v848_v41  ;;  %v4199_v41 = vld [vmem:[#allocation4 + $0x100] sm:$0xff]  }
 0x56f   :  { %650 = vst.msk [vmem:[#allocation2 + $0x8] sm:$0xff] %vm64_vm1, %v648_v44  ;;  %v844_v44 = vadd.f32 %v828_v40, %v812_v39  ;;  %v850_v48 = vmax.f32 %v845_v43, 0.0  ;;  %v4205_v43 = vld [vmem:[#allocation4 + $0x130] sm:$0xff]  }
 0x574   :  { %v669_v49 = vld [vmem:[#allocation2] sm:$0xff] }
 0x576   :  { %v670_v50 = vld [vmem:[#allocation2 + $0x8] sm:$0xff] }
 0x577   :  { %v671_v51 = vpack.c.bf16 %v670_v50, %v669_v49 }
 0x579   :  { %4038 = vmatpush3.bf16.msra.mxu1 %v671_v51  ;;  %4044 = vmatpush3.bf16.msra.mxu0 %v671_v51  ;;  %v849_v51 = vmax.f32 %v844_v44, 0.0 }
 0x57a   :  { %3718 = vmatprep.subr.bf16.mxu1 %v4167_v54  ;;  %3740 = vmatprep.subr.bf16.mxu0 %v4169_v56  ;;  %v763_v54 = vld [vmem:[%s4896_s4] sm:$0xff] }
 0x57c   :  { %4046 = vmatmul.mubr.msk.bf16.vlgmr.msra.gmra.mrb[24].mxu0 %vm64_vm1, %v668_v52  ;;  %4040 = vmatmul.mubr.msk.bf16.vlgmr.msra.gmra.mrb[12].mxu1 %vm64_vm1, %v660_v53 }
 0x57d   :  { %3719 = vmatpush3.bf16.msra.mxu1 %v4168_v55  ;;  %3741 = vmatpush3.bf16.msra.mxu0 %v4171_v58  ;;  %v855_v55 = vpack.c.bf16 %v850_v48, %v850_v48  ;;  %v854_v58 = vpack.c.bf16 %v849_v51, %v849_v51  ;;  %v4208_v48 = vld [vmem:[#allocation4 + $0x1c0] sm:$0xff]   ;;  %v4211_v51 = vld [vmem:[#allocation4 + $0x210] sm:$0xff]  }
 0x57e   :  { %3720 = vmatprep.subr.bf16.mxu1 %v4170_v57  ;;  %3742 = vmatprep.subr.bf16.mxu0 %v4173_v59  ;;  %v4653_v59 = vsub.s32 4, %v4608_v9 }
 0x57f   :  { %1216 = vmatprep.mubr.bf16.mxu1 %v853_v47  ;;  %1256 = vmatprep.mubr.bf16.mxu0 %v855_v55  ;;  %v4215_v55 = vld [vmem:[#allocation4 + $0x220] sm:$0xff]  }
 0x581   :  { %3721 = vmatpush3.bf16.msra.mxu1 %v4172_v60  ;;  %3743 = vmatpush3.bf16.msra.mxu0 %v4175_v61  ;;  %v804_v60 = vrot.slane %v4619_v16, %v4653_v59 }
 0x582   :  { %3722 = vmatprep.subr.bf16.mxu1 %v4174_v62  ;;  %3744 = vmatprep.subr.bf16.mxu0 %v4177_v63  ;;  %v836_v62 = vrot.slane %v4634_v25, %v4653_v59  ;;  %v4202_v25 = vld [vmem:[#allocation4 + $0x118] sm:$0xff]  }
 0x583   :  { %v814_v61 = vmul.f32 0.0, %v804_v60  ;;  %v4219_v60 = vld [vmem:[#allocation4 + $0x230] sm:$0xff]  }
 0x585   :  { %3723 = vmatpush3.bf16.msra.mxu1 %v4176_v1  ;;  %3745 = vmatpush3.bf16.msra.mxu0 %v4179_v2  ;;  %v4659_v63 = vadd.f32 %v836_v62, %v814_v61  ;;  %v4664_v2 = vld [vmem:[%s4902_s10 + $0x5] sm:$0x1f] }
 0x586   :  { %3724 = vmatprep.subr.bf16.mxu1 %v4178_v3  ;;  %3746 = vmatprep.subr.bf16.mxu0 %v4181_v4  ;;  %v4669_v3 = vld [vmem:[%s4902_s10 + $0xa] sm:$0x1f]  ;;  %v4674_v4 = vld [vmem:[%s4902_s10 + $0xf] sm:$0x1f]  ;;  %v1316_v9 = vrot.slane %v4664_v2, %v4611_v10  ;;  %v1328_v61 = vrot.slane %v4664_v2, %v4624_v18 }
 0x587   :  { %v851_v44 = vmax.f32 %v4659_v63, 0.0  ;;  %v4220_v63 = vld [vmem:[#allocation4 + $0x1f0] sm:$0xff]  }
 0x589   :  { %3725 = vmatpush3.bf16.msra.mxu1 %v4180_v5  ;;  %3747 = vmatpush3.bf16.msra.mxu0 %v4183_v6  ;;  %v4679_v5 = vld [vmem:[%s4902_s10 + $0x14] sm:$0x1f]  ;;  %v4684_v6 = vld [vmem:[%s4903_s11 + $0x5] sm:$0x1f]  ;;  %v856_v47 = vpack.c.bf16 %v851_v44, %v851_v44 }
 0x58a   :  { %3726 = vmatprep.subr.bf16.mxu1 %v4182_v7  ;;  %3748 = vmatprep.subr.bf16.mxu0 %v4185_v11  ;;  %v4689_v7 = vld [vmem:[%s4903_s11 + $0xa] sm:$0x1f]  ;;  %v1847_v11 = vrot.slane %v4669_v3, %v4611_v10  ;;  %v1349_v23 = vrot.slane %v4684_v6, %v4611_v10  ;;  %v4233_v44 = vld [vmem:[#allocation4 + $0x2d0] sm:$0xff]  }
 0x58d   :  { %3727 = vmatpush3.bf16.msra.mxu1 %v4184_v8  ;;  %3749 = vmatpush3.bf16.msra.mxu0 %v4187_v13  ;;  %v4694_v8 = vld [vmem:[%s4903_s11 + $0xf] sm:$0x1f]  ;;  %v4705_v13 = vld [vmem:[%s4903_s11 + $0x14] sm:$0x1f] }
 0x58e   :  { %3728 = vmatprep.subr.bf16.mxu1 %v4186_v12  ;;  %3750 = vmatprep.subr.bf16.mxu0 %v4189_v20  ;;  %v2378_v12 = vrot.slane %v4674_v4, %v4611_v10  ;;  %v2909_v20 = vrot.slane %v4679_v5, %v4611_v10  ;;  %v2411_v26 = vrot.slane %v4694_v8, %v4611_v10 }
 0x58f   :  { %v2942_v28 = vrot.slane %v4705_v13, %v4611_v10 }
 0x591   :  { %3729 = vmatpush3.bf16.msra.mxu1 %v4188_v15  ;;  %3751 = vmatpush3.bf16.msra.mxu0 %v4191_v22 }
 0x592   :  { %3730 = vmatprep.subr.bf16.mxu1 %v4190_v21  ;;  %3752 = vmatprep.subr.bf16.mxu0 %v4193_v29 }
 0x595   :  { %3731 = vmatpush3.bf16.msra.mxu1 %v4192_v24  ;;  %3753 = vmatpush3.bf16.msra.mxu0 %v4195_v31  ;;  %v1880_v24 = vrot.slane %v4689_v7, %v4611_v10  ;;  %v4201_v10 = vld [vmem:[#allocation4 + $0x110] sm:$0xff]  }
 0x596   :  { %3732 = vmatprep.subr.bf16.mxu1 %v4194_v30  ;;  %3754 = vmatprep.subr.bf16.mxu0 %v4197_v35 }
 0x599   :  { %3733 = vmatpush3.bf16.msra.mxu1 %v4196_v34  ;;  %3755 = vmatpush3.bf16.msra.mxu0 %v4198_v42  ;;  %v4204_v42 = vld [vmem:[#allocation4 + $0x128] sm:$0xff]  }
 0x59a   :  { %4049 = vmatprep.subr.bf16.mxu1 %v4396_v0 }
 0x59c   :  { %1257 = vmatmul.mubr.bf16.vlgmr.msra.gmra.mrb[28].mxu0 %v854_v58  ;;  %v4218_v58 = vld [vmem:[#allocation4 + $0x1e8] sm:$0xff]  }
 0x64f   :  { %v752_v45 = vpop.f32.mrb[24].mxu0  ;;  %v709_v46 = vpop.f32.mrb[12].mxu1 }
 0x650   :  { %765 = vrot.lane.b32.xlu1 %v752_v45, %s4399_s30  ;;  %v4041_v49 = vpop.f32.mrb[13].mxu1  ;;  %v4047_v50 = vpop.f32.mrb[25].mxu0  ;;  %v4206_v45 = vld [vmem:[#allocation4 + $0x138] sm:$0xff]  }
 0x651   :  { %v712_v52 = vpop.f32.mrb[14].mxu1  ;;  %v755_v53 = vpop.f32.mrb[26].mxu0  ;;  %v4209_v49 = vld [vmem:[#allocation4 + $0x208] sm:$0xff]  }
 0x652   :  { %v4042_v56 = vpop.f32.mrb[15].mxu1  ;;  %v4048_v57 = vpop.f32.mrb[27].mxu0  ;;  %v4210_v50 = vld [vmem:[#allocation4 + $0x1c8] sm:$0xff]   ;;  %v4212_v52 = vld [vmem:[#allocation4 + $0x1d0] sm:$0xff]   ;;  %v4213_v53 = vld [vmem:[#allocation4 + $0x218] sm:$0xff]  }
 0x653   :  { %v4216_v56 = vld [vmem:[#allocation4 + $0x1e0] sm:$0xff]   ;;  %v4217_v57 = vld [vmem:[#allocation4 + $0x228] sm:$0xff]  }
 0x654   :  { %769 = vrot.lane.b32.xlu1 %v763_v54, %s4400_s16  ;;  %v4214_v54 = vld [vmem:[#allocation4 + $0x1d8] sm:$0xff]  }
 0x66f   :  { %v3756_v62 = vpop.f32.mrb[28].mxu0 }
 0x6c2   :  { %v766_v1 = vpop.permute.xlu1 %765 }
 0x6c3   :  { %v772_v15 = vsel %vm64_vm1, %v709_v46, %v766_v1  ;;  %v4207_v46 = vld [vmem:[#allocation4 + $0x200] sm:$0xff]   ;;  %v1324_v1 = vrot.slane %v4664_v2, %v4627_v19 }
 0x6c6   :  { %v770_v21 = vpop.permute.xlu1 %769 }
 0x6c7   :  { %v774_v22 = vsel %vm773_vm4, %v772_v15, %v770_v21  ;;  %v1341_v15 = vmul.f32 0.0, %v1328_v61  ;;  %v1357_v21 = vrot.slane %v4684_v6, %v4627_v19  ;;  %v4250_v61 = vld [vmem:[#allocation4 + $0x2b0] sm:$0xff]  }
 0x6c8   :  { %v776_v27 = vsel %vm775_vm5, %v774_v22, 0.0 }
 0x6c9   :  { %v810_v29 = vmul.f32 %v788_v17, %v776_v27  ;;  %v1338_v30 = vmul.f32 %v1316_v9, %v776_v27  ;;  %v1869_v31 = vmul.f32 %v1847_v11, %v776_v27  ;;  %v2400_v33 = vmul.f32 %v2378_v12, %v776_v27  ;;  %v4200_v17 = vld [vmem:[#allocation4 + $0x108] sm:$0xff]   ;;  %v3757_v9 = vpop.f32.mrb[29].mxu0  ;;  %v4221_v11 = vld [vmem:[#allocation4 + $0x238] sm:$0xff]   ;;  %v4223_v12 = vld [vmem:[#allocation4 + $0x180] sm:$0xff]  }
 0x6ca   :  { %v2931_v34 = vmul.f32 %v2909_v20, %v776_v27  ;;  %v1361_v20 = vrot.slane %v4684_v6, %v4624_v18  ;;  %v4750_v22 = vadd.f32 %v3757_v9, %v3756_v62  ;;  %v3759_v27 = vpop.f32.mrb[30].mxu0  ;;  %3771 = vmatprep.subr.bf16.mxu0 %v4223_v12  ;;  %v4251_v62 = vld [vmem:[#allocation4 + $0x1b8] sm:$0xff]   ;;  %v3479_v12 = vld [vmem:[%s4905_s13] ss:$0 sm:$0xff] }
 0x6cb   :  { %v842_v35 = vadd.f32 %v820_v32, %v810_v29  ;;  %v4724_v36 = vadd.f32 %v1349_v23, %v1338_v30  ;;  %v4726_v37 = vadd.f32 %v1880_v24, %v1869_v31  ;;  %v4728_v38 = vadd.f32 %v2411_v26, %v2400_v33  ;;  %v4203_v32 = vld [vmem:[#allocation4 + $0x120] sm:$0xff]   ;;  %v4222_v23 = vld [vmem:[#allocation4 + $0x1f8] sm:$0xff]   ;;  %v4227_v30 = vld [vmem:[#allocation4 + $0x188] sm:$0xff]   ;;  %v3760_v31 = vpop.f32.mrb[31].mxu0 }
 0x6cc   :  { %v4730_v39 = vadd.f32 %v2942_v28, %v2931_v34  ;;  %v4224_v24 = vld [vmem:[#allocation4 + $0x140] sm:$0xff]   ;;  %v1340_v26 = vmul.f32 0.0, %v1324_v1  ;;  %v1374_v28 = vadd.f32 %v1361_v20, %v1341_v15  ;;  %v4228_v34 = vld [vmem:[#allocation4 + $0x148] sm:$0xff]   ;;  %v4253_v1 = vld [vmem:[#allocation4 + $0x2f8] sm:$0xff]   ;;  %v1320_v27 = vrot.slane %v4664_v2, %v4614_v14 }
 0x6cd   :  { %v847_v40 = vmax.f32 %v842_v35, 0.0  ;;  %v4225_v29 = vld [vmem:[#allocation4 + $0x2c0] sm:$0xff]   ;;  %3772 = vmatpush3.bf16.msra.mxu0 %v4224_v24  ;;  %v4254_v9 = vld [vmem:[#allocation4 + $0x2b8] sm:$0xff]  }
 0x6ce   :  { %v1373_v33 = vadd.f32 %v1357_v21, %v1340_v26  ;;  %v1379_v35 = vmax.f32 %v1374_v28, 0.0  ;;  %3773 = vmatprep.subr.bf16.mxu0 %v4227_v30  ;;  %v1851_v28 = vrot.slane %v4669_v3, %v4614_v14 }
 0x6cf   :  { %v852_v16 = vpack.c.bf16 %v847_v40, %v847_v40  ;;  %v4231_v40 = vld [vmem:[#allocation4 + $0x190] sm:$0xff]  }
 0x6d1   :  { %1217 = vmatmul.mubr.bf16.vlgmr.msra.gmra.mrb[16].mxu1 %v852_v16  ;;  %v1384_v16 = vpack.c.bf16 %v1379_v35, %v1379_v35  ;;  %3774 = vmatpush3.bf16.msra.mxu0 %v4228_v34  ;;  %v1884_v34 = vrot.slane %v4689_v7, %v4614_v14 }
 0x6d2   :  { %4050 = vmatpush3.bf16.msra.mxu1 %v4199_v41  ;;  %4065 = vmatprep.mubr.msk.bf16.mxu1 %vm4397_vm0, %v4396_v0  ;;  %v1378_v41 = vmax.f32 %v1373_v33, 0.0  ;;  %v1353_v33 = vrot.slane %v4684_v6, %v4614_v14 }
 0x6d3   :  { %4051 = vmatprep.subr.bf16.mxu1 %v4396_v0  ;;  %3775 = vmatprep.subr.bf16.mxu0 %v4231_v40 }
 0x6d6   :  { %4052 = vmatpush3.bf16.msra.mxu1 %v4200_v17  ;;  %v4226_v17 = vld [vmem:[#allocation4 + $0x280] sm:$0xff]  }
 0x6d7   :  { %4053 = vmatprep.subr.bf16.mxu1 %v4396_v0 }
 0x6da   :  { %4054 = vmatpush3.bf16.msra.mxu1 %v4201_v10  ;;  %v1383_v10 = vpack.c.bf16 %v1378_v41, %v1378_v41 }
 0x6db   :  { %4055 = vmatprep.subr.bf16.mxu1 %v4396_v0 }
 0x6de   :  { %4056 = vmatpush3.bf16.msra.mxu1 %v4202_v25  ;;  %v4229_v25 = vld [vmem:[#allocation4 + $0x2c8] sm:$0xff]  }
 0x6df   :  { %4057 = vmatprep.subr.bf16.mxu1 %v4396_v0 }
 0x6e2   :  { %4058 = vmatpush3.bf16.msra.mxu1 %v4203_v32  ;;  %v4232_v32 = vld [vmem:[#allocation4 + $0x150] sm:$0xff]  }
 0x6e3   :  { %4059 = vmatprep.subr.bf16.mxu1 %v4396_v0  ;;  %3776 = vmatpush3.bf16.msra.mxu0 %v4232_v32 }
 0x6e6   :  { %4060 = vmatpush3.bf16.msra.mxu1 %v4204_v42  ;;  %v4235_v42 = vld [vmem:[#allocation4 + $0x198] sm:$0xff]  }
 0x6e7   :  { %4061 = vmatprep.subr.bf16.mxu1 %v4396_v0  ;;  %3777 = vmatprep.subr.bf16.mxu0 %v4235_v42 }
 0x6ea   :  { %4062 = vmatpush3.bf16.msra.mxu1 %v4205_v43  ;;  %v4230_v43 = vld [vmem:[#allocation4 + $0x288] sm:$0xff]  }
 0x6eb   :  { %4063 = vmatprep.subr.bf16.mxu1 %v4396_v0 }
 0x6ee   :  { %4064 = vmatpush3.bf16.msra.mxu1 %v4206_v45  ;;  %v4236_v45 = vld [vmem:[#allocation4 + $0x158] sm:$0xff]  }
 0x6ef   :  { %3793 = vmatprep.subr.bf16.mxu1 %v4207_v46  ;;  %v4239_v46 = vld [vmem:[#allocation4 + $0x1a0] sm:$0xff]   ;;  %3778 = vmatpush3.bf16.msra.mxu0 %v4236_v45 }
 0x6f0   :  { %3779 = vmatprep.subr.bf16.mxu0 %v4239_v46  ;;  %v4255_v45 = vld [vmem:[#allocation4 + $0x240] sm:$0xff]  }
 0x6f1   :  { %4066 = vmatmul.mubr.bf16.vlgmr.msra.gmra.mrb[20].mxu1 %v856_v47  ;;  %v4234_v47 = vld [vmem:[#allocation4 + $0x290] sm:$0xff]  }
 0x6f2   :  { %3794 = vmatpush3.bf16.msra.mxu1 %v4208_v48  ;;  %1787 = vmatprep.mubr.bf16.mxu1 %v1384_v16  ;;  %v4237_v48 = vld [vmem:[#allocation4 + $0x2d8] sm:$0xff]  }
 0x6f3   :  { %3795 = vmatprep.subr.bf16.mxu1 %v4209_v49  ;;  %v4240_v49 = vld [vmem:[#allocation4 + $0x160] sm:$0xff]  }
 0x6f4   :  { %3780 = vmatpush3.bf16.msra.mxu0 %v4240_v49  ;;  %v1332_v49 = vrot.slane %v4664_v2, %v4653_v59  ;;  %v4262_v2 = vld [vmem:[#allocation4 + $0x278] sm:$0xff]  }
 0x6f6   :  { %3796 = vmatpush3.bf16.msra.mxu1 %v4210_v50  ;;  %v4243_v50 = vld [vmem:[#allocation4 + $0x1a8] sm:$0xff]  }
 0x6f7   :  { %3797 = vmatprep.subr.bf16.mxu1 %v4211_v51  ;;  %v4238_v51 = vld [vmem:[#allocation4 + $0x298] sm:$0xff]   ;;  %3781 = vmatprep.subr.bf16.mxu0 %v4243_v50  ;;  %v4259_v50 = vld [vmem:[#allocation4 + $0x260] sm:$0xff]  }
 0x6fa   :  { %3798 = vmatpush3.bf16.msra.mxu1 %v4212_v52  ;;  %v4241_v52 = vld [vmem:[#allocation4 + $0x2e0] sm:$0xff]  }
 0x6fb   :  { %3799 = vmatprep.subr.bf16.mxu1 %v4213_v53  ;;  %v4242_v53 = vld [vmem:[#allocation4 + $0x2a0] sm:$0xff]  }
 0x6fe   :  { %3800 = vmatpush3.bf16.msra.mxu1 %v4214_v54  ;;  %v4244_v54 = vld [vmem:[#allocation4 + $0x168] sm:$0xff]  }
 0x6ff   :  { %3801 = vmatprep.subr.bf16.mxu1 %v4215_v55  ;;  %v4245_v55 = vld [vmem:[#allocation4 + $0x2e8] sm:$0xff]   ;;  %3782 = vmatpush3.bf16.msra.mxu0 %v4244_v54 }
 0x702   :  { %3802 = vmatpush3.bf16.msra.mxu1 %v4216_v56  ;;  %v4246_v56 = vld [vmem:[#allocation4 + $0x2a8] sm:$0xff]  }
 0x703   :  { %3803 = vmatprep.subr.bf16.mxu1 %v4217_v57  ;;  %v4247_v57 = vld [vmem:[#allocation4 + $0x1b0] sm:$0xff]  }
 0x704   :  { %3783 = vmatprep.subr.bf16.mxu0 %v4247_v57 }
 0x706   :  { %3804 = vmatpush3.bf16.msra.mxu1 %v4218_v58  ;;  %v4248_v58 = vld [vmem:[#allocation4 + $0x170] sm:$0xff]  }
 0x707   :  { %3805 = vmatprep.subr.bf16.mxu1 %v4219_v60  ;;  %v4249_v60 = vld [vmem:[#allocation4 + $0x2f0] sm:$0xff]   ;;  %3784 = vmatpush3.bf16.msra.mxu0 %v4248_v58 }
 0x708   :  { %3785 = vmatprep.subr.bf16.mxu0 %v4251_v62 }
 0x70a   :  { %3806 = vmatpush3.bf16.msra.mxu1 %v4220_v63  ;;  %v4252_v63 = vld [vmem:[#allocation4 + $0x178] sm:$0xff]  }
 0x70b   :  { %3807 = vmatprep.subr.bf16.mxu1 %v4221_v11  ;;  %3786 = vmatpush3.bf16.msra.mxu0 %v4252_v63  ;;  %v4263_v63 = vld [vmem:[#allocation4 + $0x340] sm:$0xff]  }
 0x70c   :  { %4069 = vmatprep.subr.bf16.mxu0 %v4396_v0 }
 0x70e   :  { %3808 = vmatpush3.bf16.msra.mxu1 %v4222_v23 }
 0x70f   :  { %3824 = vmatprep.subr.bf16.mxu1 %v4225_v29 }
 0x711   :  { %1788 = vmatmul.mubr.bf16.vlgmr.msra.gmra.mrb[24].mxu1 %v1383_v10  ;;  %v1376_v10 = vmax.f32 %v4724_v36, 0.0  ;;  %v4257_v36 = vld [vmem:[#allocation4 + $0x250] sm:$0xff]  }
 0x712   :  { %3825 = vmatpush3.bf16.msra.mxu1 %v4226_v17 }
 0x713   :  { %3826 = vmatprep.subr.bf16.mxu1 %v4229_v25  ;;  %v1907_v25 = vmax.f32 %v4726_v37, 0.0  ;;  %v1381_v46 = vpack.c.bf16 %v1376_v10, %v1376_v10  ;;  %v4258_v37 = vld [vmem:[#allocation4 + $0x258] sm:$0xff]  }
 0x714   :  { %v4283_v10 = vld [vmem:[#allocation4 + $0x378] sm:$0xff]  }
 0x716   :  { %3827 = vmatpush3.bf16.msra.mxu1 %v4230_v43 }
 0x717   :  { %3828 = vmatprep.subr.bf16.mxu1 %v4233_v44 }
 0x71a   :  { %3829 = vmatpush3.bf16.msra.mxu1 %v4234_v47  ;;  %v1912_v47 = vpack.c.bf16 %v1907_v25, %v1907_v25  ;;  %v4285_v25 = vld [vmem:[#allocation4 + $0x3b0] sm:$0xff]  }
 0x71b   :  { %3830 = vmatprep.subr.bf16.mxu1 %v4237_v48  ;;  %v4256_v48 = vld [vmem:[#allocation4 + $0x248] sm:$0xff]  }
 0x71e   :  { %3831 = vmatpush3.bf16.msra.mxu1 %v4238_v51  ;;  %v1342_v51 = vmul.f32 0.0, %v1332_v49 }
 0x71f   :  { %3832 = vmatprep.subr.bf16.mxu1 %v4241_v52  ;;  %v1365_v52 = vrot.slane %v4684_v6, %v4653_v59 }
 0x721   :  { %v1375_v54 = vadd.f32 %v1365_v52, %v1342_v51  ;;  %v4311_v51 = vld [vmem:[#allocation4 + $0x480] sm:$0xff]  }
 0x722   :  { %3833 = vmatpush3.bf16.msra.mxu1 %v4242_v53  ;;  %v4260_v53 = vld [vmem:[#allocation4 + $0x268] sm:$0xff]   ;;  %v4312_v52 = vld [vmem:[#allocation4 + $0x440] sm:$0xff]  }
 0x723   :  { %3834 = vmatprep.subr.bf16.mxu1 %v4245_v55  ;;  %v4261_v55 = vld [vmem:[#allocation4 + $0x270] sm:$0xff]  }
 0x726   :  { %3835 = vmatpush3.bf16.msra.mxu1 %v4246_v56  ;;  %v1380_v56 = vmax.f32 %v1375_v54, 0.0  ;;  %v4316_v54 = vld [vmem:[#allocation4 + $0x448] sm:$0xff]  }
 0x727   :  { %3836 = vmatprep.subr.bf16.mxu1 %v4249_v60 }
 0x728   :  { %v1385_v57 = vpack.c.bf16 %v1380_v56, %v1380_v56  ;;  %v4320_v56 = vld [vmem:[#allocation4 + $0x450] sm:$0xff]  }
 0x72a   :  { %3837 = vmatpush3.bf16.msra.mxu1 %v4250_v61 }
 0x72b   :  { %3838 = vmatprep.subr.bf16.mxu1 %v4253_v1  ;;  %v4264_v1 = vld [vmem:[#allocation4 + $0x300] sm:$0xff]  }
 0x72e   :  { %3839 = vmatpush3.bf16.msra.mxu1 %v4254_v9  ;;  %v4265_v9 = vld [vmem:[#allocation4 + $0x348] sm:$0xff]  }
 0x72f   :  { %4089 = vmatprep.subr.bf16.mxu1 %v4396_v0 }
 0x7a4   :  { %v3734_v11 = vpop.f32.mrb[16].mxu1 }
 0x7a5   :  { %v3735_v15 = vpop.f32.mrb[17].mxu1 }
 0x7a6   :  { %v3736_v20 = vadd.f32 %v3735_v15, %v3734_v11  ;;  %v3737_v21 = vpop.f32.mrb[18].mxu1  ;;  %v4267_v11 = vld [vmem:[#allocation4 + $0x380] sm:$0xff]   ;;  %v4270_v15 = vld [vmem:[#allocation4 + $0x388] sm:$0xff]  }
 0x7a7   :  { %v3738_v23 = vpop.f32.mrb[19].mxu1  ;;  %v4269_v21 = vld [vmem:[#allocation4 + $0x310] sm:$0xff]  }
 0x7a8   :  { %v1219_v24 = vadd.f32 %v3736_v20, %v3479_v12  ;;  %v4266_v12 = vld [vmem:[#allocation4 + $0x308] sm:$0xff]   ;;  %v4268_v20 = vld [vmem:[#allocation4 + $0x350] sm:$0xff]  }
 0x7a9   :  { %v4273_v23 = vld [vmem:[#allocation4 + $0x390] sm:$0xff]  }
 0x7aa   :  { %v1259_v26 = vadd.f32 %v4750_v22, %v1219_v24  ;;  %v4271_v24 = vld [vmem:[#allocation4 + $0x358] sm:$0xff]  }
 0x7c4   :  { %v1298_v29 = vpop.f32.mrb[20].mxu1 }
 0x7c5   :  { %v4762_v30 = vadd.f32 %v1298_v29, %v1259_v26  ;;  %v4067_v31 = vpop.f32.mrb[21].mxu1  ;;  %v4272_v26 = vld [vmem:[#allocation4 + $0x318] sm:$0xff]   ;;  %v4275_v29 = vld [vmem:[#allocation4 + $0x320] sm:$0xff]  }
 0x7c6   :  { %v1301_v35 = vpop.f32.mrb[22].mxu1  ;;  %v4277_v31 = vld [vmem:[#allocation4 + $0x368] sm:$0xff]  }
 0x7c7   :  { %v4068_v40 = vpop.f32.mrb[23].mxu1  ;;  %v1339_v22 = vmul.f32 %v1320_v27, %v4762_v30  ;;  %v1870_v41 = vmul.f32 %v1851_v28, %v4762_v30  ;;  %v4276_v27 = vld [vmem:[#allocation4 + $0x398] sm:$0xff]   ;;  %v4274_v28 = vld [vmem:[#allocation4 + $0x360] sm:$0xff]   ;;  %v4280_v35 = vld [vmem:[#allocation4 + $0x370] sm:$0xff]  }
 0x7c8   :  { %v4282_v40 = vld [vmem:[#allocation4 + $0x3a8] sm:$0xff]  }
 0x7c9   :  { %v1372_v16 = vadd.f32 %v1353_v33, %v1339_v22  ;;  %v1903_v17 = vadd.f32 %v1884_v34, %v1870_v41  ;;  %v4278_v33 = vld [vmem:[#allocation4 + $0x328] sm:$0xff]   ;;  %v4279_v34 = vld [vmem:[#allocation4 + $0x3a0] sm:$0xff]   ;;  %v1859_v22 = vrot.slane %v4669_v3, %v4624_v18  ;;  %v4281_v41 = vld [vmem:[#allocation4 + $0x330] sm:$0xff]  }
 0x7cb   :  { %v1377_v32 = vmax.f32 %v1372_v16, 0.0  ;;  %v1908_v42 = vmax.f32 %v1903_v17, 0.0  ;;  %v1872_v16 = vmul.f32 0.0, %v1859_v22  ;;  %v1892_v17 = vrot.slane %v4689_v7, %v4624_v18 }
 0x7cd   :  { %v1382_v43 = vpack.c.bf16 %v1377_v32, %v1377_v32  ;;  %v1913_v44 = vpack.c.bf16 %v1908_v42, %v1908_v42  ;;  %v1905_v32 = vadd.f32 %v1892_v17, %v1872_v16  ;;  %v1863_v42 = vrot.slane %v4669_v3, %v4653_v59 }
 0x7cf   :  { %1747 = vmatprep.mubr.bf16.mxu0 %v1382_v43  ;;  %2278 = vmatprep.mubr.bf16.mxu1 %v1913_v44  ;;  %v4284_v43 = vld [vmem:[#allocation4 + $0x338] sm:$0xff]   ;;  %v1910_v44 = vmax.f32 %v1905_v32, 0.0  ;;  %v4289_v32 = vld [vmem:[#allocation4 + $0x408] sm:$0xff]  }
 0x7d0   :  { %1748 = vmatmul.mubr.bf16.vlgmr.msra.gmra.mrb[32].mxu0 %v1381_v46  ;;  %2279 = vmatmul.mubr.bf16.vlgmr.msra.gmra.mrb[28].mxu1 %v1912_v47  ;;  %v1896_v46 = vrot.slane %v4689_v7, %v4653_v59  ;;  %v4286_v47 = vld [vmem:[#allocation4 + $0x400] sm:$0xff]  }
 0x7d1   :  { %4070 = vmatpush3.bf16.msra.mxu0 %v4255_v45  ;;  %4085 = vmatprep.mubr.msk.bf16.mxu0 %vm4397_vm0, %v4396_v0  ;;  %v1873_v45 = vmul.f32 0.0, %v1863_v42 }
 0x7d2   :  { %4071 = vmatprep.subr.bf16.mxu0 %v4396_v0  ;;  %4105 = vmatprep.mubr.msk.bf16.mxu1 %vm4397_vm0, %v4396_v0 }
 0x7d3   :  { %4090 = vmatpush3.bf16.msra.mxu1 %v4267_v11 }
 0x7d4   :  { %4091 = vmatprep.subr.bf16.mxu1 %v4396_v0 }
 0x7d5   :  { %4072 = vmatpush3.bf16.msra.mxu0 %v4256_v48  ;;  %v1915_v48 = vpack.c.bf16 %v1910_v44, %v1910_v44  ;;  %v4293_v44 = vld [vmem:[#allocation4 + $0x418] sm:$0xff]  }
 0x7d6   :  { %4073 = vmatprep.subr.bf16.mxu0 %v4396_v0 }
 0x7d7   :  { %4092 = vmatpush3.bf16.msra.mxu1 %v4270_v15 }
 0x7d8   :  { %4093 = vmatprep.subr.bf16.mxu1 %v4396_v0 }
 0x7d9   :  { %4074 = vmatpush3.bf16.msra.mxu0 %v4257_v36  ;;  %v1906_v36 = vadd.f32 %v1896_v46, %v1873_v45  ;;  %v4294_v45 = vld [vmem:[#allocation4 + $0x3d8] sm:$0xff]   ;;  %v4295_v46 = vld [vmem:[#allocation4 + $0x420] sm:$0xff]  }
 0x7da   :  { %4075 = vmatprep.subr.bf16.mxu0 %v4396_v0 }
 0x7db   :  { %4094 = vmatpush3.bf16.msra.mxu1 %v4273_v23  ;;  %v1911_v49 = vmax.f32 %v1906_v36, 0.0  ;;  %v4298_v36 = vld [vmem:[#allocation4 + $0x3e8] sm:$0xff]  }
 0x7dc   :  { %4095 = vmatprep.subr.bf16.mxu1 %v4396_v0 }
 0x7dd   :  { %4076 = vmatpush3.bf16.msra.mxu0 %v4258_v37  ;;  %v4288_v37 = vld [vmem:[#allocation4 + $0x3b8] sm:$0xff]  }
 0x7de   :  { %4077 = vmatprep.subr.bf16.mxu0 %v4396_v0 }
 0x7df   :  { %4096 = vmatpush3.bf16.msra.mxu1 %v4276_v27  ;;  %v2415_v27 = vrot.slane %v4694_v8, %v4614_v14 }
 0x7e0   :  { %4097 = vmatprep.subr.bf16.mxu1 %v4396_v0 }
 0x7e1   :  { %4078 = vmatpush3.bf16.msra.mxu0 %v4259_v50  ;;  %v1916_v50 = vpack.c.bf16 %v1911_v49, %v1911_v49  ;;  %v4300_v49 = vld [vmem:[#allocation4 + $0x3f0] sm:$0xff]  }
 0x7e2   :  { %4079 = vmatprep.subr.bf16.mxu0 %v4396_v0 }
 0x7e3   :  { %4098 = vmatpush3.bf16.msra.mxu1 %v4279_v34 }
 0x7e4   :  { %v3809_v58 = vpop.f32.mrb[24].mxu1  ;;  %4099 = vmatprep.subr.bf16.mxu1 %v4396_v0 }
 0x7e5   :  { %4080 = vmatpush3.bf16.msra.mxu0 %v4260_v53  ;;  %v3810_v60 = vpop.f32.mrb[25].mxu1  ;;  %v4315_v53 = vld [vmem:[#allocation4 + $0x488] sm:$0xff]  }
 0x7e6   :  { %4081 = vmatprep.subr.bf16.mxu0 %v4396_v0  ;;  %v4787_v6 = vadd.f32 %v3810_v60, %v3809_v58  ;;  %v3812_v61 = vpop.f32.mrb[26].mxu1 }
 0x7e7   :  { %v3813_v62 = vpop.f32.mrb[27].mxu1  ;;  %4100 = vmatpush3.bf16.msra.mxu1 %v4282_v40  ;;  %v3523_v61 = vld [vmem:[%s4905_s13 + $0x1] ss:$0 sm:$0xff] }
 0x7e8   :  { %4101 = vmatprep.subr.bf16.mxu1 %v4396_v0 }
 0x7e9   :  { %4082 = vmatpush3.bf16.msra.mxu0 %v4261_v55  ;;  %v4319_v55 = vld [vmem:[#allocation4 + $0x490] sm:$0xff]  }
 0x7ea   :  { %4083 = vmatprep.subr.bf16.mxu0 %v4396_v0 }
 0x7eb   :  { %4102 = vmatpush3.bf16.msra.mxu1 %v4285_v25 }
 0x7ec   :  { %4103 = vmatprep.subr.bf16.mxu1 %v4396_v0 }
 0x7ed   :  { %4084 = vmatpush3.bf16.msra.mxu0 %v4262_v2  ;;  %v4323_v2 = vld [vmem:[#allocation4 + $0x498] sm:$0xff]  }
 0x7ee   :  { %3846 = vmatprep.subr.bf16.mxu0 %v4263_v63 }
 0x7ef   :  { %4104 = vmatpush3.bf16.msra.mxu1 %v4288_v37  ;;  %v4299_v37 = vld [vmem:[#allocation4 + $0x430] sm:$0xff]  }
 0x7f0   :  { %4086 = vmatmul.mubr.bf16.vlgmr.msra.gmra.mrb[36].mxu0 %v1385_v57  ;;  %3899 = vmatprep.subr.bf16.mxu1 %v4311_v51  ;;  %v4324_v57 = vld [vmem:[#allocation4 + $0x458] sm:$0xff]  }
 0x7f1   :  { %3847 = vmatpush3.bf16.msra.mxu0 %v4264_v1  ;;  %2318 = vmatprep.mubr.bf16.mxu0 %v1915_v48  ;;  %v4297_v48 = vld [vmem:[#allocation4 + $0x428] sm:$0xff]   ;;  %v4302_v51 = vld [vmem:[#allocation4 + $0x3f8] sm:$0xff]  }
 0x7f2   :  { %3848 = vmatprep.subr.bf16.mxu0 %v4265_v9  ;;  %4106 = vmatmul.mubr.bf16.vlgmr.msra.gmra.mrb[32].mxu1 %v1916_v50  ;;  %v4301_v50 = vld [vmem:[#allocation4 + $0x438] sm:$0xff]  }
 0x7f3   :  { %3900 = vmatpush3.bf16.msra.mxu1 %v4312_v52  ;;  %v2438_v52 = vmax.f32 %v4728_v38, 0.0  ;;  %v2394_v38 = vrot.slane %v4674_v4, %v4653_v59 }
 0x7f4   :  { %3901 = vmatprep.subr.bf16.mxu1 %v4315_v53  ;;  %v4303_v53 = vld [vmem:[#allocation4 + $0x4c0] sm:$0xff]  }
 0x7f5   :  { %3849 = vmatpush3.bf16.msra.mxu0 %v4266_v12 }
 0x7f6   :  { %3850 = vmatprep.subr.bf16.mxu0 %v4268_v20 }
 0x7f7   :  { %3902 = vmatpush3.bf16.msra.mxu1 %v4316_v54  ;;  %v2443_v54 = vpack.c.bf16 %v2438_v52, %v2438_v52 }
 0x7f8   :  { %3903 = vmatprep.subr.bf16.mxu1 %v4319_v55  ;;  %v4304_v55 = vld [vmem:[#allocation4 + $0x4c8] sm:$0xff]  }
 0x7f9   :  { %3851 = vmatpush3.bf16.msra.mxu0 %v4269_v21 }
 0x7fa   :  { %3852 = vmatprep.subr.bf16.mxu0 %v4271_v24  ;;  %v2382_v24 = vrot.slane %v4674_v4, %v4614_v14 }
 0x7fb   :  { %3904 = vmatpush3.bf16.msra.mxu1 %v4320_v56  ;;  %v4305_v56 = vld [vmem:[#allocation4 + $0x4d0] sm:$0xff]  }
 0x7fc   :  { %3905 = vmatprep.subr.bf16.mxu1 %v4323_v2  ;;  %v4306_v2 = vld [vmem:[#allocation4 + $0x4d8] sm:$0xff]  }
 0x7fd   :  { %3853 = vmatpush3.bf16.msra.mxu0 %v4272_v26  ;;  %v2401_v26 = vmul.f32 %v2382_v24, %v4762_v30  ;;  %v4321_v24 = vld [vmem:[#allocation4 + $0x5d0] sm:$0xff]  }
 0x7fe   :  { %3854 = vmatprep.subr.bf16.mxu0 %v4274_v28  ;;  %v1855_v28 = vrot.slane %v4669_v3, %v4627_v19  ;;  %v4290_v3 = vld [vmem:[#allocation4 + $0x3c8] sm:$0xff]  }
 0x7ff   :  { %3906 = vmatpush3.bf16.msra.mxu1 %v4324_v57  ;;  %v4307_v57 = vld [vmem:[#allocation4 + $0x4e0] sm:$0xff]  }
 0x801   :  { %3855 = vmatpush3.bf16.msra.mxu0 %v4275_v29 }
 0x802   :  { %3856 = vmatprep.subr.bf16.mxu0 %v4277_v31 }
 0x805   :  { %3857 = vmatpush3.bf16.msra.mxu0 %v4278_v33  ;;  %v1888_v33 = vrot.slane %v4689_v7, %v4627_v19  ;;  %v4292_v7 = vld [vmem:[#allocation4 + $0x3d0] sm:$0xff]  }
 0x806   :  { %3858 = vmatprep.subr.bf16.mxu0 %v4280_v35 }
 0x809   :  { %3859 = vmatpush3.bf16.msra.mxu0 %v4281_v41 }
 0x80a   :  { %3860 = vmatprep.subr.bf16.mxu0 %v4283_v10  ;;  %v4287_v10 = vld [vmem:[#allocation4 + $0x3c0] sm:$0xff]  }
 0x80d   :  { %3861 = vmatpush3.bf16.msra.mxu0 %v4284_v43  ;;  %v4291_v43 = vld [vmem:[#allocation4 + $0x410] sm:$0xff]  }
 0x80e   :  { %3877 = vmatprep.subr.bf16.mxu0 %v4286_v47  ;;  %v4296_v47 = vld [vmem:[#allocation4 + $0x3e0] sm:$0xff]  }
 0x8a3   :  { %v3787_v58 = vpop.f32.mrb[32].mxu0  ;;  %v3840_v60 = vpop.f32.mrb[28].mxu1 }
 0x8a4   :  { %v3788_v62 = vpop.f32.mrb[33].mxu0  ;;  %v3841_v63 = vpop.f32.mrb[29].mxu1 }
 0x8a5   :  { %v3789_v1 = vadd.f32 %v3788_v62, %v3787_v58  ;;  %v4807_v9 = vadd.f32 %v3841_v63, %v3840_v60  ;;  %v3790_v11 = vpop.f32.mrb[34].mxu0  ;;  %v3843_v12 = vpop.f32.mrb[30].mxu1  ;;  %v2404_v58 = vmul.f32 0.0, %v2394_v38  ;;  %v2427_v60 = vrot.slane %v4694_v8, %v4653_v59  ;;  %v4309_v63 = vld [vmem:[#allocation4 + $0x4f0] sm:$0xff]  }
 0x8a6   :  { %v3791_v15 = vpop.f32.mrb[35].mxu0  ;;  %v3844_v20 = vpop.f32.mrb[31].mxu1  ;;  %v4310_v11 = vld [vmem:[#allocation4 + $0x4f8] sm:$0xff]   ;;  %v4313_v12 = vld [vmem:[#allocation4 + $0x5c0] sm:$0xff]  }
 0x8a7   :  { %v1750_v21 = vadd.f32 %v3789_v1, %v3523_v61  ;;  %v4308_v61 = vld [vmem:[#allocation4 + $0x4e8] sm:$0xff]   ;;  %v2437_v62 = vadd.f32 %v2427_v60, %v2404_v58  ;;  %v4314_v20 = vld [vmem:[#allocation4 + $0x580] sm:$0xff]  }
 0x8a9   :  { %v1790_v23 = vadd.f32 %v4787_v6, %v1750_v21  ;;  %v2434_v6 = vadd.f32 %v2415_v27, %v2401_v26  ;;  %v2442_v1 = vmax.f32 %v2437_v62, 0.0  ;;  %v4317_v21 = vld [vmem:[#allocation4 + $0x5c8] sm:$0xff]   ;;  %v4322_v26 = vld [vmem:[#allocation4 + $0x590] sm:$0xff]   ;;  %v4325_v27 = vld [vmem:[#allocation4 + $0x5d8] sm:$0xff]  }
 0x8ab   :  { %v2439_v16 = vmax.f32 %v2434_v6, 0.0  ;;  %v2447_v15 = vpack.c.bf16 %v2442_v1, %v2442_v1  ;;  %v4331_v6 = vld [vmem:[#allocation4 + $0x4a8] sm:$0xff]  }
 0x8ad   :  { %v2444_v42 = vpack.c.bf16 %v2439_v16, %v2439_v16 }
 0x8c3   :  { %v1829_v29 = vpop.f32.mrb[36].mxu0 }
 0x8c4   :  { %v4817_v31 = vadd.f32 %v1829_v29, %v1790_v23  ;;  %v4087_v34 = vpop.f32.mrb[37].mxu0  ;;  %v4318_v23 = vld [vmem:[#allocation4 + $0x588] sm:$0xff]   ;;  %v4327_v29 = vld [vmem:[#allocation4 + $0x4a0] sm:$0xff]  }
 0x8c5   :  { %v1832_v35 = vpop.f32.mrb[38].mxu0  ;;  %v4329_v34 = vld [vmem:[#allocation4 + $0x5e0] sm:$0xff]   ;;  %3907 = vmatprep.subr.bf16.mxu1 %v4327_v29 }
 0x8c6   :  { %v1871_v40 = vmul.f32 %v1855_v28, %v4817_v31  ;;  %v4088_v22 = vpop.f32.mrb[39].mxu0  ;;  %v4326_v28 = vld [vmem:[#allocation4 + $0x598] sm:$0xff]   ;;  %v4330_v35 = vld [vmem:[#allocation4 + $0x5a0] sm:$0xff]  }
 0x8c7   :  { %v4332_v22 = vld [vmem:[#allocation4 + $0x468] sm:$0xff]  }
 0x8c8   :  { %v1904_v41 = vadd.f32 %v1888_v33, %v1871_v40  ;;  %v4328_v33 = vld [vmem:[#allocation4 + $0x460] sm:$0xff]   ;;  %v2360_v40 = vpop.f32.mrb[32].mxu1 }
 0x8c9   :  { %3908 = vmatpush3.bf16.msra.mxu1 %v4328_v33  ;;  %v4107_v16 = vpop.f32.mrb[33].mxu1  ;;  %v4345_v33 = vld [vmem:[#allocation4 + $0x548] sm:$0xff]  }
 0x8ca   :  { %v1909_v17 = vmax.f32 %v1904_v41, 0.0  ;;  %v4333_v41 = vld [vmem:[#allocation4 + $0x5e8] sm:$0xff]   ;;  %3909 = vmatprep.subr.bf16.mxu1 %v4331_v6  ;;  %v4349_v6 = vld [vmem:[#allocation4 + $0x558] sm:$0xff]  }
 0x8cb   :  { %v4353_v16 = vld [vmem:[#allocation4 + $0x568] sm:$0xff]  }
 0x8cc   :  { %v1914_v25 = vpack.c.bf16 %v1909_v17, %v1909_v17  ;;  %v4334_v17 = vld [vmem:[#allocation4 + $0x5a8] sm:$0xff]  }
 0x8cd   :  { %3910 = vmatpush3.bf16.msra.mxu1 %v4332_v22  ;;  %v4351_v22 = vld [vmem:[#allocation4 + $0x560] sm:$0xff]  }
 0x8ce   :  { %2319 = vmatmul.mubr.bf16.vlgmr.msra.gmra.mrb[40].mxu0 %v1914_v25 }
 0x8cf   :  { %3878 = vmatpush3.bf16.msra.mxu0 %v4287_v10  ;;  %2809 = vmatprep.mubr.bf16.mxu0 %v2444_v42  ;;  %v2363_v10 = vpop.f32.mrb[34].mxu1  ;;  %v4336_v42 = vld [vmem:[#allocation4 + $0x470] sm:$0xff]  }
 0x8d0   :  { %3879 = vmatprep.subr.bf16.mxu0 %v4289_v32  ;;  %v4108_v25 = vpop.f32.mrb[35].mxu1  ;;  %v4335_v32 = vld [vmem:[#allocation4 + $0x4b0] sm:$0xff]  }
 0x8d1   :  { %3911 = vmatprep.subr.bf16.mxu1 %v4335_v32 }
 0x8d2   :  { %3912 = vmatpush3.bf16.msra.mxu1 %v4336_v42  ;;  %v4354_v42 = vld [vmem:[#allocation4 + $0x528] sm:$0xff]  }
 0x8d3   :  { %3880 = vmatpush3.bf16.msra.mxu0 %v4290_v3  ;;  %v4337_v3 = vld [vmem:[#allocation4 + $0x5f0] sm:$0xff]  }
 0x8d4   :  { %3881 = vmatprep.subr.bf16.mxu0 %v4291_v43  ;;  %v4338_v43 = vld [vmem:[#allocation4 + $0x5b0] sm:$0xff]  }
 0x8d7   :  { %3882 = vmatpush3.bf16.msra.mxu0 %v4292_v7  ;;  %v4339_v7 = vld [vmem:[#allocation4 + $0x4b8] sm:$0xff]  }
 0x8d8   :  { %3883 = vmatprep.subr.bf16.mxu0 %v4293_v44  ;;  %v4340_v44 = vld [vmem:[#allocation4 + $0x478] sm:$0xff]   ;;  %3913 = vmatprep.subr.bf16.mxu1 %v4339_v7  ;;  %v4356_v7 = vld [vmem:[#allocation4 + $0x530] sm:$0xff]  }
 0x8d9   :  { %3914 = vmatpush3.bf16.msra.mxu1 %v4340_v44  ;;  %v4357_v44 = vld [vmem:[#allocation4 + $0x578] sm:$0xff]  }
 0x8db   :  { %3884 = vmatpush3.bf16.msra.mxu0 %v4294_v45  ;;  %v4341_v45 = vld [vmem:[#allocation4 + $0x5f8] sm:$0xff]  }
 0x8dc   :  { %3885 = vmatprep.subr.bf16.mxu0 %v4295_v46  ;;  %v4342_v46 = vld [vmem:[#allocation4 + $0x5b8] sm:$0xff]  }
 0x8df   :  { %3886 = vmatpush3.bf16.msra.mxu0 %v4296_v47  ;;  %v4343_v47 = vld [vmem:[#allocation4 + $0x540] sm:$0xff]  }
 0x8e0   :  { %3887 = vmatprep.subr.bf16.mxu0 %v4297_v48  ;;  %3930 = vmatprep.subr.bf16.mxu1 %v4343_v47  ;;  %v3567_v48 = vld [vmem:[%s4905_s13 + $0x2] ss:$0 sm:$0xff]  ;;  %v4359_v47 = vld [vmem:[#allocation4 + $0x600] sm:$0xff]  }
 0x8e1   :  { %v2281_v52 = vadd.f32 %v4807_v9, %v3567_v48  ;;  %v2390_v9 = vrot.slane %v4674_v4, %v4624_v18 }
 0x8e3   :  { %3888 = vmatpush3.bf16.msra.mxu0 %v4298_v36  ;;  %v2386_v36 = vrot.slane %v4674_v4, %v4627_v19 }
 0x8e4   :  { %3889 = vmatprep.subr.bf16.mxu0 %v4299_v37  ;;  %v2917_v37 = vrot.slane %v4679_v5, %v4627_v19 }
 0x8e6   :  { %v2933_v38 = vmul.f32 %v2917_v37, %v4817_v31  ;;  %v4361_v37 = vld [vmem:[#allocation4 + $0x610] sm:$0xff]  }
 0x8e7   :  { %3890 = vmatpush3.bf16.msra.mxu0 %v4300_v49 }
 0x8e8   :  { %3891 = vmatprep.subr.bf16.mxu0 %v4301_v50  ;;  %v2913_v50 = vrot.slane %v4679_v5, %v4614_v14 }
 0x8eb   :  { %3892 = vmatpush3.bf16.msra.mxu0 %v4302_v51 }
 0x8ec   :  { %4109 = vmatprep.subr.bf16.mxu0 %v4396_v0 }
 0x8ee   :  { %2810 = vmatmul.mubr.bf16.vlgmr.msra.gmra.mrb[44].mxu0 %v2443_v54 }
 0x8ef   :  { %4110 = vmatpush3.bf16.msra.mxu0 %v4303_v53  ;;  %4125 = vmatprep.mubr.msk.bf16.mxu0 %vm4397_vm0, %v4396_v0 }
 0x8f0   :  { %4111 = vmatprep.subr.bf16.mxu0 %v4396_v0 }
 0x8f3   :  { %4112 = vmatpush3.bf16.msra.mxu0 %v4304_v55  ;;  %v2946_v55 = vrot.slane %v4705_v13, %v4614_v14  ;;  %v2932_v14 = vmul.f32 %v2913_v50, %v4762_v30 }
 0x8f4   :  { %4113 = vmatprep.subr.bf16.mxu0 %v4396_v0 }
 0x8f7   :  { %4114 = vmatpush3.bf16.msra.mxu0 %v4305_v56  ;;  %v2402_v56 = vmul.f32 %v2386_v36, %v4817_v31  ;;  %v2954_v31 = vrot.slane %v4705_v13, %v4624_v18  ;;  %v4360_v36 = vld [vmem:[#allocation4 + $0x608] sm:$0xff]  }
 0x8f8   :  { %4115 = vmatprep.subr.bf16.mxu0 %v4396_v0 }
 0x8fb   :  { %4116 = vmatpush3.bf16.msra.mxu0 %v4306_v2  ;;  %v2419_v2 = vrot.slane %v4694_v8, %v4627_v19 }
 0x8fc   :  { %4117 = vmatprep.subr.bf16.mxu0 %v4396_v0 }
 0x8fd   :  { %v2435_v1 = vadd.f32 %v2419_v2, %v2402_v56  ;;  %v4366_v56 = vld [vmem:[#allocation4 + $0x638] sm:$0xff]   ;;  %v3611_v2 = vld [vmem:[%s4905_s13 + $0x3] ss:$0 sm:$0xff] }
 0x8ff   :  { %4118 = vmatpush3.bf16.msra.mxu0 %v4307_v57  ;;  %v2950_v57 = vrot.slane %v4705_v13, %v4627_v19  ;;  %v2440_v4 = vmax.f32 %v2435_v1, 0.0  ;;  %v4346_v13 = vld [vmem:[#allocation4 + $0x508] sm:$0xff]  }
 0x900   :  { %4119 = vmatprep.subr.bf16.mxu0 %v4396_v0 }
 0x901   :  { %v2445_v29 = vpack.c.bf16 %v2440_v4, %v2440_v4 }
 0x903   :  { %4120 = vmatpush3.bf16.msra.mxu0 %v4308_v61  ;;  %v2921_v61 = vrot.slane %v4679_v5, %v4624_v18 }
 0x904   :  { %4121 = vmatprep.subr.bf16.mxu0 %v4396_v0 }
 0x907   :  { %4122 = vmatpush3.bf16.msra.mxu0 %v4309_v63  ;;  %v2423_v63 = vrot.slane %v4694_v8, %v4624_v18 }
 0x908   :  { %4123 = vmatprep.subr.bf16.mxu0 %v4396_v0 }
 0x90b   :  { %4124 = vmatpush3.bf16.msra.mxu0 %v4310_v11  ;;  %v2966_v11 = vadd.f32 %v2950_v57, %v2933_v38 }
 0x90c   :  { %3952 = vmatprep.subr.bf16.mxu0 %v4313_v12 }
 0x90e   :  { %4126 = vmatmul.mubr.bf16.vlgmr.msra.gmra.mrb[48].mxu0 %v2447_v15  ;;  %v2965_v15 = vadd.f32 %v2946_v55, %v2932_v14  ;;  %v4365_v55 = vld [vmem:[#allocation4 + $0x630] sm:$0xff]  }
 0x90f   :  { %3953 = vmatpush3.bf16.msra.mxu0 %v4314_v20 }
 0x910   :  { %3954 = vmatprep.subr.bf16.mxu0 %v4317_v21 }
 0x913   :  { %3955 = vmatpush3.bf16.msra.mxu0 %v4318_v23  ;;  %v2971_v23 = vmax.f32 %v2966_v11, 0.0 }
 0x914   :  { %3956 = vmatprep.subr.bf16.mxu0 %v4321_v24 }
 0x915   :  { %v2976_v8 = vpack.c.bf16 %v2971_v23, %v2971_v23 }
 0x917   :  { %3957 = vmatpush3.bf16.msra.mxu0 %v4322_v26  ;;  %v2970_v26 = vmax.f32 %v2965_v15, 0.0  ;;  %v4368_v15 = vld [vmem:[%s4903_s11 + $0x14] sm:$0x1f] }
 0x918   :  { %3958 = vmatprep.subr.bf16.mxu0 %v4325_v27 }
 0x919   :  { %v2975_v18 = vpack.c.bf16 %v2970_v26, %v2970_v26  ;;  %v3655_v26 = vld [vmem:[%s4905_s13 + $0x4] ss:$0 sm:$0xff] }
 0x91b   :  { %3959 = vmatpush3.bf16.msra.mxu0 %v4326_v28  ;;  %v4344_v28 = vld [vmem:[#allocation4 + $0x500] sm:$0xff]  }
 0x91c   :  { %3960 = vmatprep.subr.bf16.mxu0 %v4329_v34  ;;  %v4347_v34 = vld [vmem:[#allocation4 + $0x550] sm:$0xff]  }
 0x91f   :  { %3961 = vmatpush3.bf16.msra.mxu0 %v4330_v35  ;;  %v4348_v35 = vld [vmem:[#allocation4 + $0x510] sm:$0xff]  }
 0x920   :  { %3962 = vmatprep.subr.bf16.mxu0 %v4333_v41  ;;  %v4352_v41 = vld [vmem:[#allocation4 + $0x520] sm:$0xff]  }
 0x923   :  { %3963 = vmatpush3.bf16.msra.mxu0 %v4334_v17 }
 0x924   :  { %3964 = vmatprep.subr.bf16.mxu0 %v4337_v3 }
 0x927   :  { %3965 = vmatpush3.bf16.msra.mxu0 %v4338_v43  ;;  %v4355_v43 = vld [vmem:[#allocation4 + $0x570] sm:$0xff]  }
 0x928   :  { %3966 = vmatprep.subr.bf16.mxu0 %v4341_v45  ;;  %v4358_v45 = vld [vmem:[#allocation4 + $0x538] sm:$0xff]  }
 0x92b   :  { %3967 = vmatpush3.bf16.msra.mxu0 %v4342_v46  ;;  %v2969_v46 = vmax.f32 %v4730_v39, 0.0 }
 0x92d   :  { %v2974_v48 = vpack.c.bf16 %v2969_v46, %v2969_v46 }
 0x9a1   :  { %v3862_v49 = vpop.f32.mrb[40].mxu0 }
 0x9a2   :  { %v3863_v51 = vpop.f32.mrb[41].mxu0 }
 0x9a3   :  { %v3864_v53 = vadd.f32 %v3863_v51, %v3862_v49  ;;  %v3865_v54 = vpop.f32.mrb[42].mxu0  ;;  %v4362_v49 = vld [vmem:[#allocation4 + $0x618] sm:$0xff]  }
 0x9a4   :  { %v3866_v58 = vpop.f32.mrb[43].mxu0  ;;  %v4364_v54 = vld [vmem:[#allocation4 + $0x628] sm:$0xff]  }
 0x9a5   :  { %v2321_v60 = vadd.f32 %v3864_v53, %v2281_v52  ;;  %v4363_v53 = vld [vmem:[#allocation4 + $0x620] sm:$0xff]  }
 0x9a7   :  { %v2361_v62 = vadd.f32 %v2360_v40, %v2321_v60  ;;  %v4350_v40 = vld [vmem:[#allocation4 + $0x518] sm:$0xff]  }
 0x9a9   :  { %v2403_v19 = vmul.f32 %v2390_v9, %v2361_v62  ;;  %v2934_v12 = vmul.f32 %v2921_v61, %v2361_v62 }
 0x9ab   :  { %v2436_v20 = vadd.f32 %v2423_v63, %v2403_v19  ;;  %v2967_v21 = vadd.f32 %v2954_v31, %v2934_v12 }
 0x9ad   :  { %v2441_v24 = vmax.f32 %v2436_v20, 0.0  ;;  %v2972_v5 = vmax.f32 %v2967_v21, 0.0  ;;  %v2958_v20 = vrot.slane %v4368_v15, %v4653_v59 }
 0x9af   :  { %v2446_v30 = vpack.c.bf16 %v2441_v24, %v2441_v24  ;;  %v2977_v27 = vpack.c.bf16 %v2972_v5, %v2972_v5 }
 0x9b1   :  { %2849 = vmatprep.mubr.bf16.mxu1 %v2446_v30  ;;  %3380 = vmatprep.mubr.bf16.mxu0 %v2977_v27 }
 0x9b2   :  { %2850 = vmatmul.mubr.bf16.vlgmr.msra.gmra.mrb[36].mxu1 %v2445_v29  ;;  %3381 = vmatmul.mubr.bf16.vlgmr.msra.gmra.mrb[52].mxu0 %v2976_v8 }
 0x9b3   :  { %3931 = vmatpush3.bf16.msra.mxu1 %v4344_v28  ;;  %3340 = vmatprep.mubr.bf16.mxu1 %v2975_v18 }
 0x9b4   :  { %3932 = vmatprep.subr.bf16.mxu1 %v4345_v33 }
 0x9b7   :  { %3933 = vmatpush3.bf16.msra.mxu1 %v4346_v13 }
 0x9b8   :  { %3934 = vmatprep.subr.bf16.mxu1 %v4347_v34 }
 0x9bb   :  { %3935 = vmatpush3.bf16.msra.mxu1 %v4348_v35 }
 0x9bc   :  { %3936 = vmatprep.subr.bf16.mxu1 %v4349_v6 }
 0x9bf   :  { %3937 = vmatpush3.bf16.msra.mxu1 %v4350_v40 }
 0x9c0   :  { %3938 = vmatprep.subr.bf16.mxu1 %v4351_v22 }
 0x9c1   :  { %v3893_v17 = vpop.f32.mrb[44].mxu0 }
 0x9c2   :  { %v3894_v10 = vpop.f32.mrb[45].mxu0 }
 0x9c3   :  { %v3895_v25 = vadd.f32 %v3894_v10, %v3893_v17  ;;  %v3896_v32 = vpop.f32.mrb[46].mxu0  ;;  %3939 = vmatpush3.bf16.msra.mxu1 %v4352_v41 }
 0x9c4   :  { %v3897_v3 = vpop.f32.mrb[47].mxu0  ;;  %3940 = vmatprep.subr.bf16.mxu1 %v4353_v16 }
 0x9c5   :  { %v2812_v9 = vadd.f32 %v3895_v25, %v3611_v2 }
 0x9c7   :  { %3941 = vmatpush3.bf16.msra.mxu1 %v4354_v42 }
 0x9c8   :  { %3942 = vmatprep.subr.bf16.mxu1 %v4355_v43 }
 0x9cb   :  { %3943 = vmatpush3.bf16.msra.mxu1 %v4356_v7 }
 0x9cc   :  { %3944 = vmatprep.subr.bf16.mxu1 %v4357_v44 }
 0x9cf   :  { %3945 = vmatpush3.bf16.msra.mxu1 %v4358_v45 }
 0x9d0   :  { %4129 = vmatprep.subr.bf16.mxu1 %v4396_v0 }
 0x9d2   :  { %3341 = vmatmul.mubr.bf16.vlgmr.msra.gmra.mrb[40].mxu1 %v2974_v48 }
 0x9d3   :  { %4130 = vmatpush3.bf16.msra.mxu1 %v4359_v47  ;;  %4145 = vmatprep.mubr.msk.bf16.mxu1 %vm4397_vm0, %v4396_v0 }
 0x9d4   :  { %4131 = vmatprep.subr.bf16.mxu1 %v4396_v0 }
 0x9d7   :  { %4132 = vmatpush3.bf16.msra.mxu1 %v4360_v36 }
 0x9d8   :  { %4133 = vmatprep.subr.bf16.mxu1 %v4396_v0 }
 0x9db   :  { %4134 = vmatpush3.bf16.msra.mxu1 %v4361_v37 }
 0x9dc   :  { %4135 = vmatprep.subr.bf16.mxu1 %v4396_v0 }
 0x9df   :  { %4136 = vmatpush3.bf16.msra.mxu1 %v4362_v49 }
 0x9e0   :  { %4137 = vmatprep.subr.bf16.mxu1 %v4396_v0 }
 0x9e1   :  { %v2891_v39 = vpop.f32.mrb[48].mxu0 }
 0x9e2   :  { %v4127_v50 = vpop.f32.mrb[49].mxu0 }
 0x9e3   :  { %v2894_v51 = vpop.f32.mrb[50].mxu0  ;;  %4138 = vmatpush3.bf16.msra.mxu1 %v4363_v53 }
 0x9e4   :  { %v4128_v52 = vpop.f32.mrb[51].mxu0  ;;  %4139 = vmatprep.subr.bf16.mxu1 %v4396_v0 }
 0x9e7   :  { %4140 = vmatpush3.bf16.msra.mxu1 %v4364_v54 }
 0x9e8   :  { %4141 = vmatprep.subr.bf16.mxu1 %v4396_v0 }
 0x9eb   :  { %4142 = vmatpush3.bf16.msra.mxu1 %v4365_v55 }
 0x9ec   :  { %4143 = vmatprep.subr.bf16.mxu1 %v4396_v0  ;;  %v4367_v0 = vld [vmem:[%s4902_s10 + $0x14] sm:$0x1f] }
 0x9ed   :  { %v2925_v19 = vrot.slane %v4367_v0, %v4653_v59 }
 0x9ef   :  { %4144 = vmatpush3.bf16.msra.mxu1 %v4366_v56 }
 0xa85   :  { %v3915_v38 = vpop.f32.mrb[36].mxu1  ;;  %v3968_v57 = vpop.f32.mrb[52].mxu0 }
 0xa86   :  { %v3916_v58 = vpop.f32.mrb[37].mxu1  ;;  %v3969_v60 = vpop.f32.mrb[53].mxu0 }
 0xa87   :  { %v3917_v61 = vadd.f32 %v3916_v58, %v3915_v38  ;;  %v3970_v14 = vadd.f32 %v3969_v60, %v3968_v57  ;;  %v3918_v62 = vpop.f32.mrb[38].mxu1  ;;  %v3971_v63 = vpop.f32.mrb[54].mxu0 }
 0xa88   :  { %v3919_v31 = vpop.f32.mrb[39].mxu1  ;;  %v3972_v1 = vpop.f32.mrb[55].mxu0 }
 0xa89   :  { %v2852_v11 = vadd.f32 %v3917_v61, %v2812_v9 }
 0xa8b   :  { %v2892_v12 = vadd.f32 %v2891_v39, %v2852_v11 }
 0xa8d   :  { %v2935_v21 = vmul.f32 %v2925_v19, %v2892_v12 }
 0xa8f   :  { %v2968_v4 = vadd.f32 %v2958_v20, %v2935_v21 }
 0xa91   :  { %v2973_v23 = vmax.f32 %v2968_v4, 0.0 }
 0xa93   :  { %v2978_v24 = vpack.c.bf16 %v2973_v23, %v2973_v23 }
 0xa95   :  { %4146 = vmatmul.mubr.bf16.vlgmr.msra.gmra.mrb[44].mxu1 %v2978_v24 }
 0xaa5   :  { %v3946_v5 = vpop.f32.mrb[40].mxu1 }
 0xaa6   :  { %v3947_v30 = vpop.f32.mrb[41].mxu1 }
 0xaa7   :  { %v3948_v27 = vadd.f32 %v3947_v30, %v3946_v5  ;;  %v3949_v28 = vpop.f32.mrb[42].mxu1 }
 0xaa8   :  { %v3950_v29 = vpop.f32.mrb[43].mxu1 }
 0xaa9   :  { %v3343_v8 = vadd.f32 %v3948_v27, %v3655_v26 }
 0xaab   :  { %v3383_v33 = vadd.f32 %v3970_v14, %v3343_v8 }
 0xb68   :  { %v3422_v18 = vpop.f32.mrb[44].mxu1 }
 0xb69   :  { %v3423_v13 = vadd.f32 %v3422_v18, %v3383_v33  ;;  %v4147_v34 = vpop.f32.mrb[45].mxu1 }
 0xb6a   :  { %v3425_v59 = vpop.f32.mrb[46].mxu1 }
 0xb6b   :  { %3428 = vst [vmem:[%s4906_s14] sm:$0xff] %v3423_v13  ;;  %v4148_v35 = vpop.f32.mrb[47].mxu1 }
 0xb6c   :  { %3433 = vsyncpa [#allocation5], 1 }

</bundles_post_ra>
